<compile_context>
chip_gen: v7x
topology: tpu7x:2x2x1
jax: 0.10.0
libtpu: 0.0.40
codegen_flags: <defaults>
</compile_context>

<pallas_src>
import functools

import jax
import jax.numpy as jnp
from jax import lax
from jax.experimental import pallas as pl
from jax.experimental.pallas import tpu as pltpu

BN_EPS = 1.001e-5


def _round_up(x, m):
    return ((x + m - 1) // m) * m


def _default_vmem_limit():
    try:
        cap = pltpu.get_tpu_info().vmem_capacity_bytes
        return int(min((cap * 3) // 4, 96 * 1024 * 1024))
    except Exception:
        return 32 * 1024 * 1024   # safe on every TPU generation


_VMEM_LIMIT = _default_vmem_limit()


# ----------------------------------------------------------------------------
# Pallas kernels
# ----------------------------------------------------------------------------
def _apply_act(x, act):
    if act == "relu":
        return jnp.maximum(x, 0.0)
    if act == "tempered_sigmoid":            # s=2, T=2, o=1  (defaults)
        return 2.0 / (1.0 + jnp.exp(-2.0 * x)) - 1.0
    return x                                  # "none"


def _mm_kernel(a_ref, b_ref, bias_ref, o_ref, acc_ref, *, act):
    @pl.when(pl.program_id(2) == 0)
    def _init():
        acc_ref[...] = jnp.zeros_like(acc_ref)

    acc_ref[...] += jnp.dot(a_ref[...].astype(jnp.bfloat16), b_ref[...],
                            preferred_element_type=jnp.float32)

    @pl.when(pl.program_id(2) == pl.num_programs(2) - 1)
    def _fin():
        r = acc_ref[...] + bias_ref[...]
        o_ref[...] = _apply_act(r, act).astype(o_ref.dtype)


def _mm_res_kernel(a_ref, b_ref, bias_ref, res_ref, o_ref, acc_ref, *, act):
    @pl.when(pl.program_id(2) == 0)
    def _init():
        acc_ref[...] = jnp.zeros_like(acc_ref)

    acc_ref[...] += jnp.dot(a_ref[...].astype(jnp.bfloat16), b_ref[...],
                            preferred_element_type=jnp.float32)

    @pl.when(pl.program_id(2) == pl.num_programs(2) - 1)
    def _fin():
        r = acc_ref[...] + bias_ref[...] + res_ref[...].astype(jnp.float32)
        o_ref[...] = _apply_act(r, act).astype(o_ref.dtype)


def _bn_act_kernel(x_ref, scale_ref, shift_ref, o_ref, *, act):
    y = x_ref[...].astype(jnp.float32) * scale_ref[...] + shift_ref[...]
    o_ref[...] = _apply_act(y, act).astype(o_ref.dtype)


# ----------------------------------------------------------------------------
# Pallas wrappers
# ----------------------------------------------------------------------------
def matmul_bias(a, wdict, n_out, *, residual=None, act="relu",
                out_dtype=jnp.bfloat16):
    """out = act( a @ W + bias (+ residual) )[:M, :n_out].

    a: (M, K) activation (bf16 or f32).  wdict["w"]: (Kp, Np) bf16 pre-padded,
    wdict["b"]: (1, Np) f32 pre-padded.
    """
    M, K = a.shape
    Kp, Np = wdict["w"].shape

    # Tile selection: fill the MXU (256-wide when possible), keep padded dims
    # divisible by the tiles, keep VMEM per step small (<~3 MiB double-buffered).
    tm = 256 if M >= 256 else _round_up(max(M, 8), 16)
    Mp = _round_up(M, tm)
    tn = 256 if Np % 256 == 0 else 128
    tk = 512 if Kp % 512 == 0 else (256 if Kp % 256 == 0 else 128)

    ap = jnp.pad(a, ((0, Mp - M), (0, Kp - K)))

    in_specs = [
        pl.BlockSpec((tm, tk), lambda i, j, k: (i, k)),
        pl.BlockSpec((tk, tn), lambda i, j, k: (k, j)),
        pl.BlockSpec((1, tn), lambda i, j, k: (0, j)),
    ]
    args = [ap, wdict["w"], wdict["b"]]

    if residual is not None:
        Mr, Nr = residual.shape
        rp = jnp.pad(residual, ((0, Mp - Mr), (0, Np - Nr)))
        in_specs.append(pl.BlockSpec((tm, tn), lambda i, j, k: (i, j)))
        args.append(rp)
        kernel = functools.partial(_mm_res_kernel, act=act)
    else:
        kernel = functools.partial(_mm_kernel, act=act)

    out = pl.pallas_call(
        kernel,
        out_shape=jax.ShapeDtypeStruct((Mp, Np), out_dtype),
        grid=(Mp // tm, Np // tn, Kp // tk),
        in_specs=in_specs,
        out_specs=pl.BlockSpec((tm, tn), lambda i, j, k: (i, j)),
        scratch_shapes=[pltpu.VMEM((tm, tn), jnp.float32)],
        compiler_params=pltpu.CompilerParams(
            dimension_semantics=("parallel", "parallel", "arbitrary"),
            vmem_limit_bytes=_VMEM_LIMIT),
    )(*args)
    return out[:M, :n_out]


def bn_act(x2d, scale, shift, *, act, out_dtype=jnp.bfloat16):
    """Per-channel affine (folded BatchNorm) + activation.  x2d: (M, C)."""
    M, C = x2d.shape
    Cp = scale.shape[1]
    tm = 256 if M >= 256 else _round_up(max(M, 8), 16)
    Mp = _round_up(M, tm)
    xp = jnp.pad(x2d, ((0, Mp - M), (0, Cp - C)))
    out = pl.pallas_call(
        functools.partial(_bn_act_kernel, act=act),
        out_shape=jax.ShapeDtypeStruct((Mp, Cp), out_dtype),
        grid=(Mp // tm,),
        in_specs=[pl.BlockSpec((tm, Cp), lambda i: (i, 0)),
                  pl.BlockSpec((1, Cp), lambda i: (0, 0)),
                  pl.BlockSpec((1, Cp), lambda i: (0, 0))],
        out_specs=pl.BlockSpec((tm, Cp), lambda i: (i, 0)),
        compiler_params=pltpu.CompilerParams(
            dimension_semantics=("parallel",),
            vmem_limit_bytes=_VMEM_LIMIT),
    )(xp, scale, shift)
    return out[:M, :C]


# ----------------------------------------------------------------------------
# Glue (NHWC)
# ----------------------------------------------------------------------------
def im2col_nhwc(x, kh, kw, stride, padding):
    """x: (N,H,W,C) -> (N*Ho*Wo, kh*kw*C); column order (kh, kw, c fastest)."""
    N, H, W, C = x.shape
    xp = jnp.pad(x, ((0, 0), (padding, padding), (padding, padding), (0, 0)))
    Ho = (H + 2 * padding - kh) // stride + 1
    Wo = (W + 2 * padding - kw) // stride + 1
    cols = []
    for i in range(kh):
        for j in range(kw):
            cols.append(xp[:, i:i + (Ho - 1) * stride + 1:stride,
                              j:j + (Wo - 1) * stride + 1:stride, :])
    patches = jnp.concatenate(cols, axis=-1)        # (N, Ho, Wo, kh*kw*C)
    return patches.reshape(N * Ho * Wo, kh * kw * C), Ho, Wo


# ----------------------------------------------------------------------------
# Parameters: raw (for the reference) + packed (folded BN, padded, bf16)
# ----------------------------------------------------------------------------
def _pack_matmul_params(w_mat, bias):
    K, Nc = w_mat.shape
    Kp, Np = _round_up(K, 128), _round_up(Nc, 128)
    w = jnp.pad(w_mat, ((0, Kp - K), (0, Np - Nc))).astype(jnp.bfloat16)
    b = jnp.pad(bias.reshape(1, -1).astype(jnp.float32),
                ((0, 0), (0, Np - Nc)))
    return {"w": w, "b": b}


def make_block_params(key, cfg):
    cin, f, k = cfg["in_channels"], cfg["filters"], cfg["kernel"]
    cout = 4 * f
    keys = jax.random.split(key, 9)

    def bn_params(kk, c):
        kg, kb, km, kv = jax.random.split(kk, 4)
        gamma = 1.0 + 0.1 * jax.random.normal(kg, (c,), jnp.float32)
        beta = 0.1 * jax.random.normal(kb, (c,), jnp.float32)
        mean = 0.1 * jax.random.normal(km, (c,), jnp.float32)
        var = 1.0 + 0.1 * jnp.abs(jax.random.normal(kv, (c,), jnp.float32))
        return gamma, beta, mean, var

    def conv_w(kk, co, ci, kh):
        fan_in = ci * kh * kh
        return jax.random.normal(kk, (co, ci, kh, kh), jnp.float32) * jnp.sqrt(2.0 / fan_in)

    raw = {
        "bn1": bn_params(keys[0], cin),
        "w1": conv_w(keys[1], f, cin, 1),
        "bn2": bn_params(keys[2], f),
        "w2": conv_w(keys[3], f, f, k),
        "bn3": bn_params(keys[4], f),
        "w3": conv_w(keys[5], cout, f, 1),
        "b3": 0.05 * jax.random.normal(keys[6], (cout,), jnp.float32),
    }
    if cfg["conv_shortcut"]:
        raw["wsc"] = conv_w(keys[7], cout, cin, 1)
        raw["bsc"] = 0.05 * jax.random.normal(keys[8], (cout,), jnp.float32)

    def bn_affine(p):
        g, b, m, v = p
        s = g / jnp.sqrt(v + BN_EPS)
        return s, b - m * s

    s1, t1 = bn_affine(raw["bn1"])
    s2, t2 = bn_affine(raw["bn2"])
    s3, t3 = bn_affine(raw["bn3"])

    cinp = _round_up(cin, 128)
    packed = {
        "bn1_scale": jnp.pad(s1.reshape(1, -1), ((0, 0), (0, cinp - cin))),
        "bn1_shift": jnp.pad(t1.reshape(1, -1), ((0, 0), (0, cinp - cin))),
        # Conv_1 (1x1, no bias) with BN_2 folded in
        "conv1": _pack_matmul_params(raw["w1"][:, :, 0, 0].T * s2[None, :], t2),
        # Conv_2 (kxk, no bias) with BN_3 folded in; K order = (kh, kw, cin)
        "conv2": _pack_matmul_params(
            jnp.transpose(raw["w2"], (2, 3, 1, 0)).reshape(k * k * f, f) * s3[None, :], t3),
        # Conv_3 (1x1, with bias), no BN
        "conv3": _pack_matmul_params(raw["w3"][:, :, 0, 0].T, raw["b3"]),
    }
    if cfg["conv_shortcut"]:
        packed["shortcut"] = _pack_matmul_params(raw["wsc"][:, :, 0, 0].T, raw["bsc"])
    return raw, packed


# ----------------------------------------------------------------------------
# Forward pass (Pallas path) and pure-JAX reference
# ----------------------------------------------------------------------------
def block_forward(cfg, params, x):
    """x: NCHW f32 -> NCHW f32 (PyTorch layout at the boundary)."""
    d, k, f = cfg["downsampling"], cfg["kernel"], cfg["filters"]
    cout = 4 * f
    act = cfg["act"]

    xh = jnp.transpose(x, (0, 2, 3, 1))                 # NCHW -> NHWC once
    N, H, W, C = xh.shape

    # BN_1 + activation (Pallas elementwise kernel); bf16 activations after this.
    pre2d = bn_act(xh.reshape(N * H * W, C), params["bn1_scale"],
                   params["bn1_shift"], act=act)
    pre = pre2d.reshape(N, H, W, C)

    # Shortcut branch
    sc = pre[:, ::d, ::d, :]                            # MaxPool2d(k=1, stride=d)
    Hs, Ws = sc.shape[1], sc.shape[2]
    if cfg["conv_shortcut"]:
        residual = matmul_bias(sc.reshape(N * Hs * Ws, C), params["shortcut"],
                               cout, act="none", out_dtype=jnp.bfloat16)
    else:
        assert C == cout, "identity shortcut requires in_channels == 4*filters"
        residual = sc.reshape(N * Hs * Ws, C)

    # Conv_1 (1x1) + BN_2 + act  (1x1 conv == plain matmul, no im2col)
    h1 = matmul_bias(pre2d, params["conv1"], f, act=act).reshape(N, H, W, f)

    # ZeroPad(1) + Conv_2 (kxk, stride=d) + BN_3 + act
    a2, Ho, Wo = im2col_nhwc(h1, k, k, d, 1)
    h2 = matmul_bias(a2, params["conv2"], f, act=act)

    # Conv_3 (1x1 + bias) + residual add, fused in the kernel epilogue (f32 out)
    out = matmul_bias(h2, params["conv3"], cout, residual=residual,
                      act="none", out_dtype=jnp.float32)
    out = out.reshape(N, Ho, Wo, cout)
    return jnp.transpose(out, (0, 3, 1, 2))             # NHWC -> NCHW once


def reference_forward(cfg, raw, x):
    d = cfg["downsampling"]

    def act(z):
        if cfg["act"] == "relu":
            return jnp.maximum(z, 0.0)
        return 2.0 / (1.0 + jnp.exp(-2.0 * z)) - 1.0

    def bn(z, p):
        g, b, m, v = p
        return ((z - m[None, :, None, None]) / jnp.sqrt(v[None, :, None, None] + BN_EPS)
                * g[None, :, None, None] + b[None, :, None, None])

    def conv(z, w, stride):
        return lax.conv_general_dilated(z, w, (stride, stride), "VALID",
                                        dimension_numbers=("NCHW", "OIHW", "NCHW"))

    h = act(bn(x, raw["bn1"]))
    if cfg["conv_shortcut"]:
        residual = conv(h, raw["wsc"], d) + raw["bsc"][None, :, None, None]
    else:
        residual = h[:, :, ::d, ::d]
    y = act(bn(conv(h, raw["w1"], 1), raw["bn2"]))
    y = jnp.pad(y, ((0, 0), (0, 0), (1, 1), (1, 1)))
    y = act(bn(conv(y, raw["w2"], d), raw["bn3"]))
    y = conv(y, raw["w3"], 1) + raw["b3"][None, :, None, None]
    return y + residual


if __name__ == "__main__":
    cfg = {
        "in_channels": 32,      # identity shortcut => in_channels == 4*filters
        "filters": 8,
        "kernel": 3,
        "downsampling": 1,
        "conv_shortcut": False,
        "act": "relu",          # TS=False default (TemperedSigmoid also supported)
    }
    key = jax.random.PRNGKey(0)
    kp, kx = jax.random.split(key)
    raw, packed = make_block_params(kp, cfg)

    x = jax.random.normal(kx, (2, cfg["in_channels"], 16, 16), jnp.float32)

    fwd = jax.jit(lambda p, xx: block_forward(cfg, p, xx))
    out = jax.block_until_ready(fwd(packed, x))

    ref = reference_forward(cfg, raw, x)
    assert out.shape == ref.shape == (2, 4 * cfg["filters"], 16, 16), out.shape
    assert bool(jnp.all(jnp.isfinite(out)))
    rel_err = float(jnp.max(jnp.abs(out - ref)) / (jnp.max(jnp.abs(ref)) + 1e-6))
    assert rel_err < 6e-2, rel_err   # bf16 intermediates vs f32 reference
    print("KERNEL_OK")
</pallas_src>

<mosaic_0001>
module attributes {stable_mosaic.version = 11 : i64} {
  func.func @_mm_kernel(%arg0: i32, %arg1: i32, %arg2: i32, %arg3: memref<256x128xbf16, #tpu.memory_space<vmem>>, %arg4: memref<128x128xbf16, #tpu.memory_space<vmem>>, %arg5: memref<1x128xf32, #tpu.memory_space<vmem>>, %arg6: memref<256x128xbf16, #tpu.memory_space<vmem>>, %arg7: memref<256x128xf32, #tpu.memory_space<vmem>>) attributes {dimension_semantics = [#tpu.dimension_semantics<parallel>, #tpu.dimension_semantics<parallel>, #tpu.dimension_semantics<arbitrary>], iteration_bounds = array<i64: 2, 1, 1>, scalar_prefetch = 0 : i64, scratch_operands = 1 : i64, tpu.core_type = #tpu.core_type<tc>, window_params = [{transform_indices = @transform_0, window_bounds = array<i64: 256, 128>}, {transform_indices = @transform_1, window_bounds = array<i64: 128, 128>}, {transform_indices = @transform_2, window_bounds = array<i64: 1, 128>}, {transform_indices = @transform_3, window_bounds = array<i64: 256, 128>}]} {
    %c0_i32 = arith.constant 0 : i32
    %0 = arith.cmpi eq, %arg2, %c0_i32 : i32
    %1 = arith.extui %0 : i1 to i32
    %c0_i32_0 = arith.constant 0 : i32
    %2 = arith.cmpi ne, %1, %c0_i32_0 : i32
    scf.if %2 {
      %cst_10 = arith.constant 0.000000e+00 : f32
      %12 = vector.broadcast %cst_10 : f32 to vector<256x128xf32>
      %c0_11 = arith.constant 0 : index
      %c0_12 = arith.constant 0 : index
      %13 = vector.load %arg7[%c0_11, %c0_12] : memref<256x128xf32, #tpu.memory_space<vmem>>, vector<256x128xf32>
      tpu.vector_store %arg7[%c0_11, %c0_12], %12 {strides = array<i32>} : memref<256x128xf32, #tpu.memory_space<vmem>>, vector<256x128xf32>,
    } else {
    }
    %c0 = arith.constant 0 : index
    %c0_1 = arith.constant 0 : index
    %3 = vector.load %arg7[%c0, %c0_1] : memref<256x128xf32, #tpu.memory_space<vmem>>, vector<256x128xf32>
    %c0_2 = arith.constant 0 : index
    %c0_3 = arith.constant 0 : index
    %4 = vector.load %arg3[%c0_2, %c0_3] : memref<256x128xbf16, #tpu.memory_space<vmem>>, vector<256x128xbf16>
    %c0_4 = arith.constant 0 : index
    %c0_5 = arith.constant 0 : index
    %5 = vector.load %arg4[%c0_4, %c0_5] : memref<128x128xbf16, #tpu.memory_space<vmem>>, vector<128x128xbf16>
    %cst = arith.constant dense<0.000000e+00> : vector<256x128xf32>
    %6 = tpu.matmul %4, %5, %cst {dimension_numbers = #tpu.dot_dimension_numbers<[1], [0], [0], [1], [0, 0, 1, 1], [], []>} : vector<256x128xbf16>, vector<128x128xbf16>, vector<256x128xf32> -> vector<256x128xf32>
    %7 = arith.addf %3, %6 : vector<256x128xf32>
    %c0_6 = arith.constant 0 : index
    %c0_7 = arith.constant 0 : index
    %8 = vector.load %arg7[%c0_6, %c0_7] : memref<256x128xf32, #tpu.memory_space<vmem>>, vector<256x128xf32>
    tpu.vector_store %arg7[%c0_6, %c0_7], %7 {strides = array<i32>} : memref<256x128xf32, #tpu.memory_space<vmem>>, vector<256x128xf32>,
    %c0_i32_8 = arith.constant 0 : i32
    %9 = arith.cmpi eq, %arg2, %c0_i32_8 : i32
    %10 = arith.extui %9 : i1 to i32
    %c0_i32_9 = arith.constant 0 : i32
    %11 = arith.cmpi ne, %10, %c0_i32_9 : i32
    scf.if %11 {
      %c0_10 = arith.constant 0 : index
      %c0_11 = arith.constant 0 : index
      %12 = vector.load %arg7[%c0_10, %c0_11] : memref<256x128xf32, #tpu.memory_space<vmem>>, vector<256x128xf32>
      %c0_12 = arith.constant 0 : index
      %c0_13 = arith.constant 0 : index
      %13 = vector.load %arg5[%c0_12, %c0_13] : memref<1x128xf32, #tpu.memory_space<vmem>>, vector<1x128xf32>
      %14 = vector.broadcast %13 : vector<1x128xf32> to vector<256x128xf32>
      %15 = arith.addf %12, %14 : vector<256x128xf32>
      %cst_14 = arith.constant 0.000000e+00 : f32
      %16 = vector.broadcast %cst_14 : f32 to vector<256x128xf32>
      %17 = arith.maximumf %15, %16 : vector<256x128xf32>
      %18 = arith.truncf %17 : vector<256x128xf32> to vector<256x128xbf16>
      %c0_15 = arith.constant 0 : index
      %c0_16 = arith.constant 0 : index
      %19 = vector.load %arg6[%c0_15, %c0_16] : memref<256x128xbf16, #tpu.memory_space<vmem>>, vector<256x128xbf16>
      tpu.vector_store %arg6[%c0_15, %c0_16], %18 {strides = array<i32>} : memref<256x128xbf16, #tpu.memory_space<vmem>>, vector<256x128xbf16>,
    } else {
    }
    return
  }
  func.func @transform_0(%arg0: i32, %arg1: i32, %arg2: i32) -> (i32, i32) {
    %c0_i32 = arith.constant 0 : i32
    return %arg0, %arg2 : i32, i32
  }
  func.func @transform_1(%arg0: i32, %arg1: i32, %arg2: i32) -> (i32, i32) {
    %c0_i32 = arith.constant 0 : i32
    return %arg2, %arg1 : i32, i32
  }
  func.func @transform_2(%arg0: i32, %arg1: i32, %arg2: i32) -> (i32, i32) {
    %c0_i32 = arith.constant 0 : i32
    %c0_i32_0 = arith.constant 0 : i32
    return %c0_i32, %arg1 : i32, i32
  }
  func.func @transform_3(%arg0: i32, %arg1: i32, %arg2: i32) -> (i32, i32) {
    %c0_i32 = arith.constant 0 : i32
    return %arg0, %arg1 : i32, i32
  }
}

module attributes {stable_mosaic.version = 11 : i64} {
  func.func @_bn_act_kernel(%arg0: i32, %arg1: memref<256x128xf32, #tpu.memory_space<vmem>>, %arg2: memref<1x128xf32, #tpu.memory_space<vmem>>, %arg3: memref<1x128xf32, #tpu.memory_space<vmem>>, %arg4: memref<256x128xbf16, #tpu.memory_space<vmem>>) attributes {dimension_semantics = [#tpu.dimension_semantics<parallel>], iteration_bounds = array<i64: 2>, scalar_prefetch = 0 : i64, scratch_operands = 0 : i64, tpu.core_type = #tpu.core_type<tc>, window_params = [{transform_indices = @transform_0, window_bounds = array<i64: 256, 128>}, {pipeline_mode = #tpu.pipeline_mode<synchronous>, transform_indices = @transform_1, window_bounds = array<i64: 1, 128>}, {pipeline_mode = #tpu.pipeline_mode<synchronous>, transform_indices = @transform_2, window_bounds = array<i64: 1, 128>}, {transform_indices = @transform_3, window_bounds = array<i64: 256, 128>}]} {
    %c0 = arith.constant 0 : index
    %c0_0 = arith.constant 0 : index
    %0 = vector.load %arg1[%c0, %c0_0] : memref<256x128xf32, #tpu.memory_space<vmem>>, vector<256x128xf32>
    %c0_1 = arith.constant 0 : index
    %c0_2 = arith.constant 0 : index
    %1 = vector.load %arg2[%c0_1, %c0_2] : memref<1x128xf32, #tpu.memory_space<vmem>>, vector<1x128xf32>
    %2 = vector.broadcast %1 : vector<1x128xf32> to vector<256x128xf32>
    %3 = arith.mulf %0, %2 : vector<256x128xf32>
    %c0_3 = arith.constant 0 : index
    %c0_4 = arith.constant 0 : index
    %4 = vector.load %arg3[%c0_3, %c0_4] : memref<1x128xf32, #tpu.memory_space<vmem>>, vector<1x128xf32>
    %5 = vector.broadcast %4 : vector<1x128xf32> to vector<256x128xf32>
    %6 = arith.addf %3, %5 : vector<256x128xf32>
    %cst = arith.constant 0.000000e+00 : f32
    %7 = vector.broadcast %cst : f32 to vector<256x128xf32>
    %8 = arith.maximumf %6, %7 : vector<256x128xf32>
    %9 = arith.truncf %8 : vector<256x128xf32> to vector<256x128xbf16>
    %c0_5 = arith.constant 0 : index
    %c0_6 = arith.constant 0 : index
    %10 = vector.load %arg4[%c0_5, %c0_6] : memref<256x128xbf16, #tpu.memory_space<vmem>>, vector<256x128xbf16>
    tpu.vector_store %arg4[%c0_5, %c0_6], %9 {strides = array<i32>} : memref<256x128xbf16, #tpu.memory_space<vmem>>, vector<256x128xbf16>,
    return
  }
  func.func @transform_0(%arg0: i32) -> (i32, i32) {
    %c0_i32 = arith.constant 0 : i32
    %c0_i32_0 = arith.constant 0 : i32
    return %arg0, %c0_i32 : i32, i32
  }
  func.func @transform_1(%arg0: i32) -> (i32, i32) {
    %c0_i32 = arith.constant 0 : i32
    %c0_i32_0 = arith.constant 0 : i32
    %c0_i32_1 = arith.constant 0 : i32
    return %c0_i32, %c0_i32_0 : i32, i32
  }
  func.func @transform_2(%arg0: i32) -> (i32, i32) {
    %c0_i32 = arith.constant 0 : i32
    %c0_i32_0 = arith.constant 0 : i32
    %c0_i32_1 = arith.constant 0 : i32
    return %c0_i32, %c0_i32_0 : i32, i32
  }
  func.func @transform_3(%arg0: i32) -> (i32, i32) {
    %c0_i32 = arith.constant 0 : i32
    %c0_i32_0 = arith.constant 0 : i32
    return %arg0, %c0_i32 : i32, i32
  }
}

module attributes {stable_mosaic.version = 11 : i64} {
  func.func @_mm_res_kernel(%arg0: i32, %arg1: i32, %arg2: i32, %arg3: memref<256x128xbf16, #tpu.memory_space<vmem>>, %arg4: memref<128x128xbf16, #tpu.memory_space<vmem>>, %arg5: memref<1x128xf32, #tpu.memory_space<vmem>>, %arg6: memref<256x128xbf16, #tpu.memory_space<vmem>>, %arg7: memref<256x128xf32, #tpu.memory_space<vmem>>, %arg8: memref<256x128xf32, #tpu.memory_space<vmem>>) attributes {dimension_semantics = [#tpu.dimension_semantics<parallel>, #tpu.dimension_semantics<parallel>, #tpu.dimension_semantics<arbitrary>], iteration_bounds = array<i64: 2, 1, 1>, scalar_prefetch = 0 : i64, scratch_operands = 1 : i64, tpu.core_type = #tpu.core_type<tc>, window_params = [{transform_indices = @transform_0, window_bounds = array<i64: 256, 128>}, {transform_indices = @transform_1, window_bounds = array<i64: 128, 128>}, {transform_indices = @transform_2, window_bounds = array<i64: 1, 128>}, {transform_indices = @transform_3, window_bounds = array<i64: 256, 128>}, {transform_indices = @transform_4, window_bounds = array<i64: 256, 128>}]} {
    %c0_i32 = arith.constant 0 : i32
    %0 = arith.cmpi eq, %arg2, %c0_i32 : i32
    %1 = arith.extui %0 : i1 to i32
    %c0_i32_0 = arith.constant 0 : i32
    %2 = arith.cmpi ne, %1, %c0_i32_0 : i32
    scf.if %2 {
      %cst_10 = arith.constant 0.000000e+00 : f32
      %12 = vector.broadcast %cst_10 : f32 to vector<256x128xf32>
      %c0_11 = arith.constant 0 : index
      %c0_12 = arith.constant 0 : index
      %13 = vector.load %arg8[%c0_11, %c0_12] : memref<256x128xf32, #tpu.memory_space<vmem>>, vector<256x128xf32>
      tpu.vector_store %arg8[%c0_11, %c0_12], %12 {strides = array<i32>} : memref<256x128xf32, #tpu.memory_space<vmem>>, vector<256x128xf32>,
    } else {
    }
    %c0 = arith.constant 0 : index
    %c0_1 = arith.constant 0 : index
    %3 = vector.load %arg8[%c0, %c0_1] : memref<256x128xf32, #tpu.memory_space<vmem>>, vector<256x128xf32>
    %c0_2 = arith.constant 0 : index
    %c0_3 = arith.constant 0 : index
    %4 = vector.load %arg3[%c0_2, %c0_3] : memref<256x128xbf16, #tpu.memory_space<vmem>>, vector<256x128xbf16>
    %c0_4 = arith.constant 0 : index
    %c0_5 = arith.constant 0 : index
    %5 = vector.load %arg4[%c0_4, %c0_5] : memref<128x128xbf16, #tpu.memory_space<vmem>>, vector<128x128xbf16>
    %cst = arith.constant dense<0.000000e+00> : vector<256x128xf32>
    %6 = tpu.matmul %4, %5, %cst {dimension_numbers = #tpu.dot_dimension_numbers<[1], [0], [0], [1], [0, 0, 1, 1], [], []>} : vector<256x128xbf16>, vector<128x128xbf16>, vector<256x128xf32> -> vector<256x128xf32>
    %7 = arith.addf %3, %6 : vector<256x128xf32>
    %c0_6 = arith.constant 0 : index
    %c0_7 = arith.constant 0 : index
    %8 = vector.load %arg8[%c0_6, %c0_7] : memref<256x128xf32, #tpu.memory_space<vmem>>, vector<256x128xf32>
    tpu.vector_store %arg8[%c0_6, %c0_7], %7 {strides = array<i32>} : memref<256x128xf32, #tpu.memory_space<vmem>>, vector<256x128xf32>,
    %c0_i32_8 = arith.constant 0 : i32
    %9 = arith.cmpi eq, %arg2, %c0_i32_8 : i32
    %10 = arith.extui %9 : i1 to i32
    %c0_i32_9 = arith.constant 0 : i32
    %11 = arith.cmpi ne, %10, %c0_i32_9 : i32
    scf.if %11 {
      %c0_10 = arith.constant 0 : index
      %c0_11 = arith.constant 0 : index
      %12 = vector.load %arg8[%c0_10, %c0_11] : memref<256x128xf32, #tpu.memory_space<vmem>>, vector<256x128xf32>
      %c0_12 = arith.constant 0 : index
      %c0_13 = arith.constant 0 : index
      %13 = vector.load %arg5[%c0_12, %c0_13] : memref<1x128xf32, #tpu.memory_space<vmem>>, vector<1x128xf32>
      %14 = vector.broadcast %13 : vector<1x128xf32> to vector<256x128xf32>
      %15 = arith.addf %12, %14 : vector<256x128xf32>
      %c0_14 = arith.constant 0 : index
      %c0_15 = arith.constant 0 : index
      %16 = vector.load %arg6[%c0_14, %c0_15] : memref<256x128xbf16, #tpu.memory_space<vmem>>, vector<256x128xbf16>
      %17 = arith.extf %16 : vector<256x128xbf16> to vector<256x128xf32>
      %18 = arith.addf %15, %17 : vector<256x128xf32>
      %c0_16 = arith.constant 0 : index
      %c0_17 = arith.constant 0 : index
      %19 = vector.load %arg7[%c0_16, %c0_17] : memref<256x128xf32, #tpu.memory_space<vmem>>, vector<256x128xf32>
      tpu.vector_store %arg7[%c0_16, %c0_17], %18 {strides = array<i32>} : memref<256x128xf32, #tpu.memory_space<vmem>>, vector<256x128xf32>,
    } else {
    }
    return
  }
  func.func @transform_0(%arg0: i32, %arg1: i32, %arg2: i32) -> (i32, i32) {
    %c0_i32 = arith.constant 0 : i32
    return %arg0, %arg2 : i32, i32
  }
  func.func @transform_1(%arg0: i32, %arg1: i32, %arg2: i32) -> (i32, i32) {
    %c0_i32 = arith.constant 0 : i32
    return %arg2, %arg1 : i32, i32
  }
  func.func @transform_2(%arg0: i32, %arg1: i32, %arg2: i32) -> (i32, i32) {
    %c0_i32 = arith.constant 0 : i32
    %c0_i32_0 = arith.constant 0 : i32
    return %c0_i32, %arg1 : i32, i32
  }
  func.func @transform_3(%arg0: i32, %arg1: i32, %arg2: i32) -> (i32, i32) {
    %c0_i32 = arith.constant 0 : i32
    return %arg0, %arg1 : i32, i32
  }
  func.func @transform_4(%arg0: i32, %arg1: i32, %arg2: i32) -> (i32, i32) {
    %c0_i32 = arith.constant 0 : i32
    return %arg0, %arg1 : i32, i32
  }
}

</mosaic_0001>

<bundles_post_ra>
// kernel: _lambda_.4
= control target key start
LH: loop header
LB: loop body
LE: loop exit
PB: predicated region body
PF: predicated region fallthrough
CT: control target
= control target key end

     0   :  { %s740_s12 = smov 0   ;;  %s887_s0 = inlined_call_operand.vmem [shape: f32[512,128], index: 0, kind: input, shape index: {}]   ;;  %s888_s1 = inlined_call_operand.vmem [shape: f32[1,128], index: 1, kind: input, shape index: {}]   ;;  %s889_s2 = inlined_call_operand.vmem [shape: f32[1,128], index: 2, kind: input, shape index: {}]   ;;  %s890_s3 = inlined_call_operand.vmem [shape: bf16[512,128], index: 3, kind: output, shape index: {}]  }
   0x1 LB: > { %s532_s13 = sadd.s32 4294967295, %s718_s12   ;;  %p536_p0 = scmp.ge.s32.totalorder %s718_s12, 1  ;;  %s718_s12 = sphi %s740_s12, %s13_s12  }
   0x2   : > { %p138_p1 = scmp.lt.s32.totalorder %s718_s12, 3 }
   0x4   : > { %p139_p2 = pnand %p536_p0, %p138_p1 }
   0x5   : > { %s537_s14 = sshll.u32 (!%p139_p2), %s532_s13, 5  ;;  %v754_v0 = vld [vmem:[%s888_s1] ss:$0 sm:$0xff] (!%p139_p2) }
   0x6   : > { %142 = sbr.rel (%p139_p2) target bundleno = 51 (0x33), region = 32  ;;  %p163_p3 = scmp.lt.s32.totalorder (!%p139_p2), %s537_s14, 63  ;;  %v764_v1 = vld [vmem:[%s889_s2] ss:$0 sm:$0xff] (!%p139_p2) }
   0xd   : > { %s892_s14 = smov (!%p163_p3, %s537_s14), 63 }
   0xe   : > { %s538_s15 = sshll.u32 %s892_s14, 3  ;;  %s540_s23 = sshll.u32 %s892_s14, 2 }
   0xf   : > { %s759_s20 = scalar_lea.vmem %s887_s0, %s538_s15  ;;  %s796_s26 = scalar_lea.vmem %s890_s3, %s540_s23 }
  0x10   : > { %v174_v2 = vld [vmem:[%s759_s20] sm:$0xff]  ;;  %v175_v3 = vld [vmem:[%s759_s20 + $0x8] sm:$0xff]  ;;  %v176_v4 = vld [vmem:[%s759_s20 + $0x10] sm:$0xff] }
  0x11   : > { %v213_v5 = vmul.f32 %v754_v0, %v174_v2  ;;  %v214_v6 = vmul.f32 %v754_v0, %v175_v3  ;;  %v177_v7 = vld [vmem:[%s759_s20 + $0x18] sm:$0xff]  ;;  %v215_v8 = vmul.f32 %v754_v0, %v176_v4  ;;  %v178_v9 = vld [vmem:[%s759_s20 + $0x20] sm:$0xff]  ;;  %v179_v10 = vld [vmem:[%s759_s20 + $0x28] sm:$0xff] }
  0x12   : > { %v216_v11 = vmul.f32 %v754_v0, %v177_v7  ;;  %v217_v12 = vmul.f32 %v754_v0, %v178_v9  ;;  %v218_v13 = vmul.f32 %v754_v0, %v179_v10  ;;  %v180_v14 = vld [vmem:[%s759_s20 + $0x30] sm:$0xff]  ;;  %v181_v15 = vld [vmem:[%s759_s20 + $0x38] sm:$0xff]  ;;  %v182_v24 = vld [vmem:[%s759_s20 + $0x40] sm:$0xff] }
  0x13   : > { %v252_v16 = vadd.f32 %v764_v1, %v213_v5  ;;  %v253_v17 = vadd.f32 %v764_v1, %v214_v6  ;;  %v254_v18 = vadd.f32 %v764_v1, %v215_v8  ;;  %v219_v19 = vmul.f32 %v754_v0, %v180_v14  ;;  %v183_v25 = vld [vmem:[%s759_s20 + $0x48] sm:$0xff]  ;;  %v184_v30 = vld [vmem:[%s759_s20 + $0x50] sm:$0xff]  ;;  %v185_v35 = vld [vmem:[%s759_s20 + $0x58] sm:$0xff] }
  0x14   : > { %v255_v20 = vadd.f32 %v764_v1, %v216_v11  ;;  %v256_v21 = vadd.f32 %v764_v1, %v217_v12  ;;  %v257_v22 = vadd.f32 %v764_v1, %v218_v13  ;;  %v220_v23 = vmul.f32 %v754_v0, %v181_v15  ;;  %v186_v36 = vld [vmem:[%s759_s20 + $0x60] sm:$0xff]  ;;  %v187_v41 = vld [vmem:[%s759_s20 + $0x68] sm:$0xff]  ;;  %v188_v42 = vld [vmem:[%s759_s20 + $0x70] sm:$0xff] }
  0x15   : > { %v284_v26 = vmax.f32 %v252_v16, 0.0  ;;  %v285_v27 = vmax.f32 %v253_v17, 0.0  ;;  %v286_v28 = vmax.f32 %v254_v18, 0.0  ;;  %v258_v29 = vadd.f32 %v764_v1, %v219_v19  ;;  %v189_v51 = vld [vmem:[%s759_s20 + $0x78] sm:$0xff]  ;;  %v190_v56 = vld [vmem:[%s759_s20 + $0x80] sm:$0xff]  ;;  %v191_v61 = vld [vmem:[%s759_s20 + $0x88] sm:$0xff] }
  0x16   : > { %v287_v31 = vmax.f32 %v255_v20, 0.0  ;;  %v288_v32 = vmax.f32 %v256_v21, 0.0  ;;  %v289_v33 = vmax.f32 %v257_v22, 0.0  ;;  %v259_v34 = vadd.f32 %v764_v1, %v220_v23  ;;  %v192_v4 = vld [vmem:[%s759_s20 + $0x90] sm:$0xff]  ;;  %v193_v5 = vld [vmem:[%s759_s20 + $0x98] sm:$0xff]  ;;  %v194_v10 = vld [vmem:[%s759_s20 + $0xa0] sm:$0xff] }
  0x17   : > { %v612_v37 = vpack.c.bf16 %v285_v27, %v284_v26  ;;  %v290_v38 = vmax.f32 %v258_v29, 0.0  ;;  %v221_v39 = vmul.f32 %v754_v0, %v182_v24  ;;  %v222_v40 = vmul.f32 %v754_v0, %v183_v25  ;;  %v195_v15 = vld [vmem:[%s759_s20 + $0xa8] sm:$0xff]  ;;  %v196_v20 = vld [vmem:[%s759_s20 + $0xb0] sm:$0xff]  ;;  %v197_v25 = vld [vmem:[%s759_s20 + $0xb8] sm:$0xff] }
  0x18   : > { %v617_v43 = vpack.c.bf16 %v287_v31, %v286_v28  ;;  %v622_v44 = vpack.c.bf16 %v289_v33, %v288_v32  ;;  %v291_v45 = vmax.f32 %v259_v34, 0.0  ;;  %v223_v46 = vmul.f32 %v754_v0, %v184_v30  ;;  %v198_v30 = vld [vmem:[%s759_s20 + $0xc0] sm:$0xff] }
  0x19   : > { %613 = vst [vmem:[%s796_s26] sm:$0xff] %v612_v37   ;;  %v260_v47 = vadd.f32 %v764_v1, %v221_v39  ;;  %v261_v48 = vadd.f32 %v764_v1, %v222_v40  ;;  %v224_v49 = vmul.f32 %v754_v0, %v185_v35  ;;  %v225_v50 = vmul.f32 %v754_v0, %v186_v36  ;;  %v199_v35 = vld [vmem:[%s759_s20 + $0xc8] sm:$0xff]  ;;  %v200_v40 = vld [vmem:[%s759_s20 + $0xd0] sm:$0xff] }
  0x1a   : > { %689 = vst [vmem:[%s796_s26 + $0x8] sm:$0xff] %v617_v43   ;;  %690 = vst [vmem:[%s796_s26 + $0x10] sm:$0xff] %v622_v44   ;;  %v627_v52 = vpack.c.bf16 %v291_v45, %v290_v38  ;;  %v262_v53 = vadd.f32 %v764_v1, %v223_v46  ;;  %v226_v54 = vmul.f32 %v754_v0, %v187_v41  ;;  %v201_v41 = vld [vmem:[%s759_s20 + $0xd8] sm:$0xff]  ;;  %v202_v46 = vld [vmem:[%s759_s20 + $0xe0] sm:$0xff] }
  0x1b   : > { %v227_v55 = vmul.f32 %v754_v0, %v188_v42  ;;  %v292_v57 = vmax.f32 %v260_v47, 0.0  ;;  %v293_v58 = vmax.f32 %v261_v48, 0.0  ;;  %v263_v59 = vadd.f32 %v764_v1, %v224_v49 }
  0x1c   : > { %v264_v60 = vadd.f32 %v764_v1, %v225_v50  ;;  %691 = vst [vmem:[%s796_s26 + $0x18] sm:$0xff] %v627_v52   ;;  %v294_v62 = vmax.f32 %v262_v53, 0.0  ;;  %v265_v63 = vadd.f32 %v764_v1, %v226_v54  ;;  %v228_v2 = vmul.f32 %v754_v0, %v189_v51  ;;  %v203_v51 = vld [vmem:[%s759_s20 + $0xe8] sm:$0xff] }
  0x1d   : > { %v266_v3 = vadd.f32 %v764_v1, %v227_v55  ;;  %v632_v6 = vpack.c.bf16 %v293_v58, %v292_v57  ;;  %v295_v7 = vmax.f32 %v263_v59, 0.0  ;;  %v229_v9 = vmul.f32 %v754_v0, %v190_v56  ;;  %v204_v56 = vld [vmem:[%s759_s20 + $0xf0] sm:$0xff] }
  0x1e   : > { %v296_v8 = vmax.f32 %v264_v60, 0.0  ;;  %v297_v11 = vmax.f32 %v265_v63, 0.0  ;;  %v267_v12 = vadd.f32 %v764_v1, %v228_v2  ;;  %v230_v14 = vmul.f32 %v754_v0, %v191_v61  ;;  %v205_v61 = vld [vmem:[%s759_s20 + $0xf8] sm:$0xff] }
  0x1f   : > { %v298_v13 = vmax.f32 %v266_v3, 0.0  ;;  %692 = vst [vmem:[%s796_s26 + $0x20] sm:$0xff] %v632_v6   ;;  %v637_v16 = vpack.c.bf16 %v295_v7, %v294_v62  ;;  %v268_v17 = vadd.f32 %v764_v1, %v229_v9  ;;  %v231_v18 = vmul.f32 %v754_v0, %v192_v4 }
  0x20   : > { %v232_v19 = vmul.f32 %v754_v0, %v193_v5  ;;  %v642_v21 = vpack.c.bf16 %v297_v11, %v296_v8  ;;  %v299_v22 = vmax.f32 %v267_v12, 0.0  ;;  %v269_v23 = vadd.f32 %v764_v1, %v230_v14 }
  0x21   : > { %v233_v24 = vmul.f32 %v754_v0, %v194_v10  ;;  %693 = vst [vmem:[%s796_s26 + $0x28] sm:$0xff] %v637_v16   ;;  %v300_v26 = vmax.f32 %v268_v17, 0.0  ;;  %v270_v27 = vadd.f32 %v764_v1, %v231_v18  ;;  %v234_v29 = vmul.f32 %v754_v0, %v195_v15 }
  0x22   : > { %v271_v28 = vadd.f32 %v764_v1, %v232_v19  ;;  %694 = vst [vmem:[%s796_s26 + $0x30] sm:$0xff] %v642_v21   ;;  %v647_v31 = vpack.c.bf16 %v299_v22, %v298_v13  ;;  %v301_v32 = vmax.f32 %v269_v23, 0.0  ;;  %v235_v34 = vmul.f32 %v754_v0, %v196_v20 }
  0x23   : > { %v272_v33 = vadd.f32 %v764_v1, %v233_v24  ;;  %v302_v36 = vmax.f32 %v270_v27, 0.0  ;;  %v273_v38 = vadd.f32 %v764_v1, %v234_v29  ;;  %v236_v39 = vmul.f32 %v754_v0, %v197_v25 }
  0x24   : > { %v303_v37 = vmax.f32 %v271_v28, 0.0  ;;  %695 = vst [vmem:[%s796_s26 + $0x38] sm:$0xff] %v647_v31   ;;  %v652_v42 = vpack.c.bf16 %v301_v32, %v300_v26  ;;  %v274_v44 = vadd.f32 %v764_v1, %v235_v34  ;;  %v237_v45 = vmul.f32 %v754_v0, %v198_v30 }
  0x25   : > { %v304_v43 = vmax.f32 %v272_v33, 0.0  ;;  %v305_v48 = vmax.f32 %v273_v38, 0.0  ;;  %v275_v49 = vadd.f32 %v764_v1, %v236_v39  ;;  %v238_v50 = vmul.f32 %v754_v0, %v199_v35 }
  0x26   : > { %v657_v47 = vpack.c.bf16 %v303_v37, %v302_v36  ;;  %696 = vst [vmem:[%s796_s26 + $0x40] sm:$0xff] %v652_v42   ;;  %v306_v52 = vmax.f32 %v274_v44, 0.0  ;;  %v276_v53 = vadd.f32 %v764_v1, %v237_v45  ;;  %v239_v54 = vmul.f32 %v754_v0, %v200_v40 }
  0x27   : > { %v240_v55 = vmul.f32 %v754_v0, %v201_v41  ;;  %v662_v57 = vpack.c.bf16 %v305_v48, %v304_v43  ;;  %v307_v58 = vmax.f32 %v275_v49, 0.0  ;;  %v277_v59 = vadd.f32 %v764_v1, %v238_v50 }
  0x28   : > { %697 = vst [vmem:[%s796_s26 + $0x48] sm:$0xff] %v657_v47   ;;  %v241_v60 = vmul.f32 %v754_v0, %v202_v46  ;;  %v308_v62 = vmax.f32 %v276_v53, 0.0  ;;  %v278_v63 = vadd.f32 %v764_v1, %v239_v54  ;;  %v242_v3 = vmul.f32 %v754_v0, %v203_v51 }
  0x29   : > { %v279_v2 = vadd.f32 %v764_v1, %v240_v55  ;;  %698 = vst [vmem:[%s796_s26 + $0x50] sm:$0xff] %v662_v57   ;;  %v667_v4 = vpack.c.bf16 %v307_v58, %v306_v52  ;;  %v309_v5 = vmax.f32 %v277_v59, 0.0  ;;  %v243_v7 = vmul.f32 %v754_v0, %v204_v56 }
  0x2a   : > { %v280_v6 = vadd.f32 %v764_v1, %v241_v60  ;;  %v310_v8 = vmax.f32 %v278_v63, 0.0  ;;  %v281_v10 = vadd.f32 %v764_v1, %v242_v3  ;;  %v244_v11 = vmul.f32 %v754_v0, %v205_v61 }
  0x2b   : > { %v311_v9 = vmax.f32 %v279_v2, 0.0  ;;  %699 = vst [vmem:[%s796_s26 + $0x58] sm:$0xff] %v667_v4   ;;  %v672_v12 = vpack.c.bf16 %v309_v5, %v308_v62  ;;  %v282_v14 = vadd.f32 %v764_v1, %v243_v7 }
  0x2c   : > { %v312_v13 = vmax.f32 %v280_v6, 0.0  ;;  %v313_v16 = vmax.f32 %v281_v10, 0.0  ;;  %v283_v17 = vadd.f32 %v764_v1, %v244_v11 }
  0x2d   : > { %v677_v15 = vpack.c.bf16 %v311_v9, %v310_v8  ;;  %700 = vst [vmem:[%s796_s26 + $0x60] sm:$0xff] %v672_v12   ;;  %v314_v18 = vmax.f32 %v282_v14, 0.0 }
  0x2e   : > { %v682_v19 = vpack.c.bf16 %v313_v16, %v312_v13  ;;  %v315_v20 = vmax.f32 %v283_v17, 0.0 }
  0x2f   : > { %701 = vst [vmem:[%s796_s26 + $0x68] sm:$0xff] %v677_v15  }
  0x30   : > { %702 = vst [vmem:[%s796_s26 + $0x70] sm:$0xff] %v682_v19   ;;  %v687_v21 = vpack.c.bf16 %v315_v20, %v314_v18 }
  0x32   : > { %703 = vst [vmem:[%s796_s26 + $0x78] sm:$0xff] %v687_v21  }
  0x33 PF: > { %s13_s12 = sadd.s32 1, %s718_s12  }
  0x34   : > { %p10_p4 = scmp.ge.s32.totalorder %s13_s12, 4  }
  0x36   :  { %12 = sbr.rel (!%p10_p4) target bundleno = 1 (0x1), region = 62 }

// kernel: _lambda_.5
= control target key start
LH: loop header
LB: loop body
LE: loop exit
PB: predicated region body
PF: predicated region fallthrough
CT: control target
= control target key end

     0   :  { %s1499_s12 = smov 0   ;;  %s1501_s13 = smov 0   ;;  %s1636_s0 = inlined_call_operand.vmem [shape: bf16[512,128], index: 0, kind: input, shape index: {}]   ;;  %s1637_s1 = inlined_call_operand.vmem [shape: bf16[128,128], index: 1, kind: input, shape index: {}]   ;;  %s1638_s2 = inlined_call_operand.vmem [shape: f32[1,128], index: 2, kind: input, shape index: {}]   ;;  %s1639_s3 = inlined_call_operand.vmem [shape: bf16[512,128], index: 3, kind: output, shape index: {}]  }
   0x1   :  { %s1503_s14 = smov 0  }
   0x2 LB: > { %s32_s15 = sadd.s32 1, %s1473_s13  ;;  %p1128_p0 = scmp.ge.s32.totalorder %s1477_s14, 1  ;;  %s1477_s14 = sphi %s1503_s14, %s13_s14   ;;  %s1473_s13 = sphi %s1501_s13, %s1641_s13   ;;  %s1469_s12 = sphi %s1499_s12, %s1640_s12  }
   0x3   : > { %p34_p1 = scmp.ge.s32.totalorder %s32_s15, 2  ;;  %p188_p2 = scmp.lt.s32.totalorder %s1477_s14, 3 }
   0x5   : > { %s1643_s15 = smov (%p34_p1, %s32_s15), 0  ;;  %p189_p3 = pnand %p1128_p0, %p188_p2 }
   0x6   : > { %v1431_v0 = vld [vmem:[%s1637_s1] sm:$0xff] (!%p189_p3)   ;;  %s1129_s18 = sshll.u32 (!%p189_p3), %s1469_s12, 5  ;;  %v1432_v1 = vld [vmem:[%s1637_s1 + $0x8] sm:$0xff] (!%p189_p3)   ;;  %v1433_v2 = vld [vmem:[%s1637_s1 + $0x10] sm:$0xff] (!%p189_p3)  }
   0x7   : > { %192 = sbr.rel (%p189_p3) target bundleno = 285 (0x11d), region = 32  ;;  %p230_p4 = scmp.lt.s32.totalorder (!%p189_p3), %s1129_s18, 63  ;;  %1343 = vmatprep.subr.bf16.mxu0 (!%p189_p3), %v1431_v0  ;;  %1391 = vmatprep.subr.bf16.mxu1 (!%p189_p3), %v1431_v0  ;;  %v1434_v3 = vld [vmem:[%s1637_s1 + $0x18] sm:$0xff] (!%p189_p3)   ;;  %v1435_v6 = vld [vmem:[%s1637_s1 + $0x20] sm:$0xff] (!%p189_p3)   ;;  %v1436_v7 = vld [vmem:[%s1637_s1 + $0x28] sm:$0xff] (!%p189_p3)  }
   0x8   : > { %1344 = vmatpush3.bf16.msra.mxu0 (!%p189_p3), %v1431_v0  ;;  %1399 = vmatpush3.bf16.msra.mxu1 (!%p189_p3), %v1431_v0  ;;  %v1437_v8 = vld [vmem:[%s1637_s1 + $0x30] sm:$0xff] (!%p189_p3)   ;;  %v1438_v9 = vld [vmem:[%s1637_s1 + $0x38] sm:$0xff] (!%p189_p3)   ;;  %v1570_v24 = vld [vmem:[%s1638_s2] ss:$0 sm:$0xff] (!%p189_p3) }
   0x9   : > { %1345 = vmatprep.subr.bf16.mxu0 (!%p189_p3), %v1432_v1  ;;  %1392 = vmatprep.subr.bf16.mxu1 (!%p189_p3), %v1432_v1 }
   0xc   : > { %1346 = vmatpush3.bf16.msra.mxu0 (!%p189_p3), %v1432_v1  ;;  %1400 = vmatpush3.bf16.msra.mxu1 (!%p189_p3), %v1432_v1 }
   0xd   : > { %1347 = vmatprep.subr.bf16.mxu0 (!%p189_p3), %v1433_v2  ;;  %1393 = vmatprep.subr.bf16.mxu1 (!%p189_p3), %v1433_v2 }
   0xe   : > { %s1645_s18 = smov (!%p230_p4, %s1129_s18), 63 }
   0xf   : > { %s1130_s23 = sshll.u32 %s1645_s18, 2 }
  0x10   : > { %s1534_s26 = scalar_lea.vmem %s1636_s0, %s1130_s23  ;;  %1348 = vmatpush3.bf16.msra.mxu0 %v1433_v2  ;;  %1401 = vmatpush3.bf16.msra.mxu1 %v1433_v2  ;;  %s1585_s17 = scalar_lea.vmem %s1639_s3, %s1130_s23 }
  0x11   : > { %v1439_v4 = vld [vmem:[%s1534_s26] sm:$0xff]   ;;  %1349 = vmatprep.subr.bf16.mxu0 %v1434_v3  ;;  %1394 = vmatprep.subr.bf16.mxu1 %v1434_v3  ;;  %v1441_v10 = vld [vmem:[%s1534_s26 + $0x8] sm:$0xff]   ;;  %v1443_v12 = vld [vmem:[%s1534_s26 + $0x10] sm:$0xff]  }
  0x12   : > { %v1440_v5 = vld [vmem:[%s1534_s26 + $0x40] sm:$0xff]   ;;  %1359 = vmatprep.mubr.bf16.mxu0 %v1439_v4  ;;  %v1442_v11 = vld [vmem:[%s1534_s26 + $0x48] sm:$0xff]   ;;  %v1444_v13 = vld [vmem:[%s1534_s26 + $0x50] sm:$0xff]  }
  0x13   : > { %1375 = vmatprep.mubr.bf16.mxu1 %v1440_v5  ;;  %v1445_v14 = vld [vmem:[%s1534_s26 + $0x18] sm:$0xff]   ;;  %v1447_v16 = vld [vmem:[%s1534_s26 + $0x20] sm:$0xff]   ;;  %v1449_v18 = vld [vmem:[%s1534_s26 + $0x28] sm:$0xff]  }
  0x14   : > { %1350 = vmatpush3.bf16.msra.mxu0 %v1434_v3  ;;  %1402 = vmatpush3.bf16.msra.mxu1 %v1434_v3  ;;  %v1446_v15 = vld [vmem:[%s1534_s26 + $0x58] sm:$0xff]   ;;  %v1448_v17 = vld [vmem:[%s1534_s26 + $0x60] sm:$0xff]   ;;  %v1450_v19 = vld [vmem:[%s1534_s26 + $0x68] sm:$0xff]  }
  0x15   : > { %1351 = vmatprep.subr.bf16.mxu0 %v1435_v6  ;;  %1395 = vmatprep.subr.bf16.mxu1 %v1435_v6  ;;  %v1451_v20 = vld [vmem:[%s1534_s26 + $0x30] sm:$0xff]   ;;  %v1453_v22 = vld [vmem:[%s1534_s26 + $0x38] sm:$0xff]  }
  0x16   : > { %v1452_v21 = vld [vmem:[%s1534_s26 + $0x70] sm:$0xff]   ;;  %v1454_v23 = vld [vmem:[%s1534_s26 + $0x78] sm:$0xff]  }
  0x18   : > { %1352 = vmatpush3.bf16.msra.mxu0 %v1435_v6  ;;  %1403 = vmatpush3.bf16.msra.mxu1 %v1435_v6 }
  0x19   : > { %1353 = vmatprep.subr.bf16.mxu0 %v1436_v7  ;;  %1396 = vmatprep.subr.bf16.mxu1 %v1436_v7 }
  0x1c   : > { %1354 = vmatpush3.bf16.msra.mxu0 %v1436_v7  ;;  %1404 = vmatpush3.bf16.msra.mxu1 %v1436_v7 }
  0x1d   : > { %1355 = vmatprep.subr.bf16.mxu0 %v1437_v8  ;;  %1397 = vmatprep.subr.bf16.mxu1 %v1437_v8 }
  0x20   : > { %1356 = vmatpush3.bf16.msra.mxu0 %v1437_v8  ;;  %1405 = vmatpush3.bf16.msra.mxu1 %v1437_v8 }
  0x21   : > { %1357 = vmatprep.subr.bf16.mxu0 %v1438_v9  ;;  %1398 = vmatprep.subr.bf16.mxu1 %v1438_v9 }
  0x24   : > { %1358 = vmatpush3.bf16.msra.mxu0 %v1438_v9  ;;  %1406 = vmatpush3.bf16.msra.mxu1 %v1438_v9 }
  0x27   : > { %1360 = vmatmul.mubr.bf16.vlgmr.msra.gmra.mrb[0].mxu0 %v1441_v10  ;;  %1376 = vmatmul.mubr.bf16.vlgmr.msra.gmra.mrb[0].mxu1 %v1442_v11 }
  0x28   : > { %1363 = vmatprep.mubr.bf16.mxu0 %v1443_v12  ;;  %1379 = vmatprep.mubr.bf16.mxu1 %v1444_v13 }
  0x2f   : > { %1364 = vmatmul.mubr.bf16.gmra.mrb[4].mxu0 %v1445_v14  ;;  %1380 = vmatmul.mubr.bf16.gmra.mrb[4].mxu1 %v1446_v15 }
  0x30   : > { %1367 = vmatprep.mubr.bf16.mxu0 %v1447_v16  ;;  %1383 = vmatprep.mubr.bf16.mxu1 %v1448_v17 }
  0x37   : > { %1368 = vmatmul.mubr.bf16.gmra.mrb[8].mxu0 %v1449_v18  ;;  %1384 = vmatmul.mubr.bf16.gmra.mrb[8].mxu1 %v1450_v19 }
  0x38   : > { %1371 = vmatprep.mubr.bf16.mxu0 %v1451_v20  ;;  %1387 = vmatprep.mubr.bf16.mxu1 %v1452_v21 }
  0x3f   : > { %1372 = vmatmul.mubr.bf16.gmra.mrb[12].mxu0 %v1453_v22  ;;  %1388 = vmatmul.mubr.bf16.gmra.mrb[12].mxu1 %v1454_v23 }
  0xfa   : > { %v1361_v25 = vpop.f32.mrb[0].mxu0  ;;  %v1377_v26 = vpop.f32.mrb[0].mxu1 }
  0xfb   : > { %v789_v27 = vadd.f32 %v1361_v25, %v1570_v24  ;;  %v805_v28 = vadd.f32 %v1377_v26, %v1570_v24  ;;  %v554_v29 = vpop.f32.mrb[1].mxu0  ;;  %v618_v30 = vpop.f32.mrb[1].mxu1 }
  0xfc   : > { %v787_v31 = vadd.f32 %v1570_v24, %v554_v29  ;;  %v803_v32 = vadd.f32 %v1570_v24, %v618_v30  ;;  %v1362_v33 = vpop.f32.mrb[2].mxu0  ;;  %v1378_v34 = vpop.f32.mrb[2].mxu1 }
  0xfd   : > { %v790_v35 = vadd.f32 %v1362_v33, %v1570_v24  ;;  %v806_v36 = vadd.f32 %v1378_v34, %v1570_v24  ;;  %v557_v37 = vpop.f32.mrb[3].mxu0  ;;  %v621_v38 = vpop.f32.mrb[3].mxu1  ;;  %v821_v41 = vmax.f32 %v789_v27, 0.0  ;;  %v837_v42 = vmax.f32 %v805_v28, 0.0 }
  0xfe   : > { %v788_v39 = vadd.f32 %v1570_v24, %v557_v37  ;;  %v804_v40 = vadd.f32 %v1570_v24, %v621_v38  ;;  %v819_v45 = vmax.f32 %v787_v31, 0.0  ;;  %v835_v46 = vmax.f32 %v803_v32, 0.0 }
  0xff   : > { %v822_v43 = vmax.f32 %v790_v35, 0.0  ;;  %v838_v44 = vmax.f32 %v806_v36, 0.0 }
 0x100   : > { %v820_v47 = vmax.f32 %v788_v39, 0.0  ;;  %v836_v48 = vmax.f32 %v804_v40, 0.0 }
 0x101   : > { %v1232_v49 = vpack.c.bf16 %v822_v43, %v821_v41  ;;  %v1272_v50 = vpack.c.bf16 %v838_v44, %v837_v42 }
 0x102   : > { %v1227_v51 = vpack.c.bf16 %v820_v47, %v819_v45  ;;  %v1267_v52 = vpack.c.bf16 %v836_v48, %v835_v46  ;;  %v1365_v53 = vpop.f32.mrb[4].mxu0  ;;  %v1381_v54 = vpop.f32.mrb[4].mxu1 }
 0x103   : > { %1304 = vst [vmem:[%s1585_s17 + $0x8] sm:$0xff] %v1232_v49   ;;  %1312 = vst [vmem:[%s1585_s17 + $0x48] sm:$0xff] %v1272_v50   ;;  %v793_v55 = vadd.f32 %v1365_v53, %v1570_v24  ;;  %v809_v56 = vadd.f32 %v1381_v54, %v1570_v24  ;;  %v570_v57 = vpop.f32.mrb[5].mxu0  ;;  %v634_v58 = vpop.f32.mrb[5].mxu1 }
 0x104   : > { %1228 = vst [vmem:[%s1585_s17] sm:$0xff] %v1227_v51   ;;  %1311 = vst [vmem:[%s1585_s17 + $0x40] sm:$0xff] %v1267_v52   ;;  %v791_v59 = vadd.f32 %v1570_v24, %v570_v57  ;;  %v807_v60 = vadd.f32 %v1570_v24, %v634_v58  ;;  %v1366_v61 = vpop.f32.mrb[6].mxu0  ;;  %v1382_v62 = vpop.f32.mrb[6].mxu1 }
 0x105   : > { %v794_v63 = vadd.f32 %v1366_v61, %v1570_v24  ;;  %v810_v0 = vadd.f32 %v1382_v62, %v1570_v24  ;;  %v573_v1 = vpop.f32.mrb[7].mxu0  ;;  %v637_v2 = vpop.f32.mrb[7].mxu1  ;;  %v825_v5 = vmax.f32 %v793_v55, 0.0  ;;  %v841_v6 = vmax.f32 %v809_v56, 0.0 }
 0x106   : > { %v792_v3 = vadd.f32 %v1570_v24, %v573_v1  ;;  %v808_v4 = vadd.f32 %v1570_v24, %v637_v2  ;;  %v823_v9 = vmax.f32 %v791_v59, 0.0  ;;  %v839_v10 = vmax.f32 %v807_v60, 0.0 }
 0x107   : > { %v826_v7 = vmax.f32 %v794_v63, 0.0  ;;  %v842_v8 = vmax.f32 %v810_v0, 0.0 }
 0x108   : > { %v824_v11 = vmax.f32 %v792_v3, 0.0  ;;  %v840_v12 = vmax.f32 %v808_v4, 0.0 }
 0x109   : > { %v1242_v13 = vpack.c.bf16 %v826_v7, %v825_v5  ;;  %v1282_v14 = vpack.c.bf16 %v842_v8, %v841_v6 }
 0x10a   : > { %v1237_v15 = vpack.c.bf16 %v824_v11, %v823_v9  ;;  %v1277_v16 = vpack.c.bf16 %v840_v12, %v839_v10  ;;  %v1369_v17 = vpop.f32.mrb[8].mxu0  ;;  %v1385_v18 = vpop.f32.mrb[8].mxu1 }
 0x10b   : > { %1306 = vst [vmem:[%s1585_s17 + $0x18] sm:$0xff] %v1242_v13   ;;  %1314 = vst [vmem:[%s1585_s17 + $0x58] sm:$0xff] %v1282_v14   ;;  %v797_v19 = vadd.f32 %v1369_v17, %v1570_v24  ;;  %v813_v20 = vadd.f32 %v1385_v18, %v1570_v24  ;;  %v586_v21 = vpop.f32.mrb[9].mxu0  ;;  %v650_v22 = vpop.f32.mrb[9].mxu1 }
 0x10c   : > { %1305 = vst [vmem:[%s1585_s17 + $0x10] sm:$0xff] %v1237_v15   ;;  %1313 = vst [vmem:[%s1585_s17 + $0x50] sm:$0xff] %v1277_v16   ;;  %v795_v23 = vadd.f32 %v1570_v24, %v586_v21  ;;  %v811_v25 = vadd.f32 %v1570_v24, %v650_v22  ;;  %v1370_v26 = vpop.f32.mrb[10].mxu0  ;;  %v1386_v27 = vpop.f32.mrb[10].mxu1 }
 0x10d   : > { %v798_v28 = vadd.f32 %v1370_v26, %v1570_v24  ;;  %v814_v29 = vadd.f32 %v1386_v27, %v1570_v24  ;;  %v589_v30 = vpop.f32.mrb[11].mxu0  ;;  %v653_v31 = vpop.f32.mrb[11].mxu1  ;;  %v829_v34 = vmax.f32 %v797_v19, 0.0  ;;  %v845_v35 = vmax.f32 %v813_v20, 0.0 }
 0x10e   : > { %v796_v32 = vadd.f32 %v1570_v24, %v589_v30  ;;  %v812_v33 = vadd.f32 %v1570_v24, %v653_v31  ;;  %v827_v38 = vmax.f32 %v795_v23, 0.0  ;;  %v843_v39 = vmax.f32 %v811_v25, 0.0 }
 0x10f   : > { %v830_v36 = vmax.f32 %v798_v28, 0.0  ;;  %v846_v37 = vmax.f32 %v814_v29, 0.0 }
 0x110   : > { %v828_v40 = vmax.f32 %v796_v32, 0.0  ;;  %v844_v41 = vmax.f32 %v812_v33, 0.0 }
 0x111   : > { %v1252_v42 = vpack.c.bf16 %v830_v36, %v829_v34  ;;  %v1292_v43 = vpack.c.bf16 %v846_v37, %v845_v35 }
 0x112   : > { %v1247_v44 = vpack.c.bf16 %v828_v40, %v827_v38  ;;  %v1287_v45 = vpack.c.bf16 %v844_v41, %v843_v39  ;;  %v1373_v46 = vpop.f32.mrb[12].mxu0  ;;  %v1389_v47 = vpop.f32.mrb[12].mxu1 }
 0x113   : > { %1308 = vst [vmem:[%s1585_s17 + $0x28] sm:$0xff] %v1252_v42   ;;  %1316 = vst [vmem:[%s1585_s17 + $0x68] sm:$0xff] %v1292_v43   ;;  %v801_v48 = vadd.f32 %v1373_v46, %v1570_v24  ;;  %v817_v49 = vadd.f32 %v1389_v47, %v1570_v24  ;;  %v602_v50 = vpop.f32.mrb[13].mxu0  ;;  %v666_v51 = vpop.f32.mrb[13].mxu1 }
 0x114   : > { %1307 = vst [vmem:[%s1585_s17 + $0x20] sm:$0xff] %v1247_v44   ;;  %1315 = vst [vmem:[%s1585_s17 + $0x60] sm:$0xff] %v1287_v45   ;;  %v799_v52 = vadd.f32 %v1570_v24, %v602_v50  ;;  %v815_v53 = vadd.f32 %v1570_v24, %v666_v51  ;;  %v1374_v54 = vpop.f32.mrb[14].mxu0  ;;  %v1390_v55 = vpop.f32.mrb[14].mxu1 }
 0x115   : > { %v802_v56 = vadd.f32 %v1374_v54, %v1570_v24  ;;  %v818_v57 = vadd.f32 %v1390_v55, %v1570_v24  ;;  %v605_v58 = vpop.f32.mrb[15].mxu0  ;;  %v669_v59 = vpop.f32.mrb[15].mxu1  ;;  %v833_v62 = vmax.f32 %v801_v48, 0.0  ;;  %v849_v63 = vmax.f32 %v817_v49, 0.0 }
 0x116   : > { %v800_v60 = vadd.f32 %v1570_v24, %v605_v58  ;;  %v816_v61 = vadd.f32 %v1570_v24, %v669_v59  ;;  %v831_v2 = vmax.f32 %v799_v52, 0.0  ;;  %v847_v3 = vmax.f32 %v815_v53, 0.0 }
 0x117   : > { %v834_v0 = vmax.f32 %v802_v56, 0.0  ;;  %v850_v1 = vmax.f32 %v818_v57, 0.0 }
 0x118   : > { %v832_v4 = vmax.f32 %v800_v60, 0.0  ;;  %v848_v5 = vmax.f32 %v816_v61, 0.0 }
 0x119   : > { %v1262_v6 = vpack.c.bf16 %v834_v0, %v833_v62  ;;  %v1302_v7 = vpack.c.bf16 %v850_v1, %v849_v63 }
 0x11a   : > { %v1257_v8 = vpack.c.bf16 %v832_v4, %v831_v2  ;;  %v1297_v9 = vpack.c.bf16 %v848_v5, %v847_v3 }
 0x11b   : > { %1310 = vst [vmem:[%s1585_s17 + $0x38] sm:$0xff] %v1262_v6   ;;  %1318 = vst [vmem:[%s1585_s17 + $0x78] sm:$0xff] %v1302_v7  }
 0x11c   : > { %1309 = vst [vmem:[%s1585_s17 + $0x30] sm:$0xff] %v1257_v8   ;;  %1317 = vst [vmem:[%s1585_s17 + $0x70] sm:$0xff] %v1297_v9  }
 0x11d PF: > { %s13_s14 = sadd.s32 1, %s1477_s14   ;;  %s1640_s12 = smov %s1473_s13 }
 0x11e   : > { %p10_p5 = scmp.ge.s32.totalorder %s13_s14, 4   ;;  %s1641_s13 = smov %s1643_s15 }
 0x120   :  { %12 = sbr.rel (!%p10_p5) target bundleno = 2 (0x2), region = 76 }

// kernel: _lambda_.7
= control target key start
LH: loop header
LB: loop body
LE: loop exit
PB: predicated region body
PF: predicated region fallthrough
CT: control target
= control target key end

     0   :  { %9 = vsyncpa [#allocation4], 0  ;;  %s1799_s0 = inlined_call_operand.vmem [shape: bf16[512,128], index: 0, kind: input, shape index: {}]   ;;  %s1800_s1 = inlined_call_operand.vmem [shape: bf16[128,128], index: 1, kind: input, shape index: {}]   ;;  %s1801_s2 = inlined_call_operand.vmem [shape: f32[1,128], index: 2, kind: input, shape index: {}]   ;;  %s1802_s3 = inlined_call_operand.vmem [shape: bf16[512,128], index: 3, kind: input, shape index: {}]   ;;  %s1803_s4 = inlined_call_operand.hbm [shape: f32[512,128], index: 4, kind: output, shape index: {}]  }
   0x1   :  { %11 = vsyncpa [#allocation4 + $0x1], 0  ;;  %s1536_s15 = smov 0   ;;  %s1538_s16 = smov 0  }
   0x2   :  { %s1540_s17 = smov 0   ;;  %s1542_s18 = smov 0  }
   0x3   :  { %s1544_s19 = smov 0   ;;  %s1546_s20 = smov 0  }
   0x4 LB: > { %s1137_s21 = sadd.s32 4294967295, %s1506_s20   ;;  %s1138_s22 = sadd.s32 4294967294, %s1506_s20   ;;  %s1506_s20 = sphi %s1546_s20, %s17_s20   ;;  %s1502_s19 = sphi %s1544_s19, %s1810_s19   ;;  %s1498_s18 = sphi %s1542_s18, %s1809_s18   ;;  %s1494_s17 = sphi %s1540_s17, %s1808_s17   ;;  %s1490_s16 = sphi %s1538_s16, %s1807_s16   ;;  %s1486_s15 = sphi %s1536_s15, %s1806_s15  }
   0x5   : > { %s36_s23 = sadd.s32 1, %s1502_s19  ;;  %s155_s24 = sadd.s32 1, %s1494_s17 }
   0x6   : > { %p38_p0 = scmp.ge.s32.totalorder %s36_s23, 2  ;;  %p165_p1 = scmp.ne.s32.totalorder %s1494_s17, %s1490_s16 }
   0x7   : > { %p166_p2 = scmp.eq.s32.totalorder %s1137_s21, 1  ;;  %p171_p3 = scmp.ne.s32.totalorder %s1490_s16, %s1486_s15 }
   0x8   : > { %s1812_s23 = smov (%p38_p0, %s36_s23), 0  ;;  %p172_p5 = scmp.eq.s32.totalorder %s1138_s22, 1 }
   0x9   : > { %p1576_p4 = por %p166_p2, %p165_p1  ;;  %s150_s26 = ssub.s32 %s1502_s19, %s1812_s23 }
   0xa   : > { %p1143_p6 = scmp.ge.s32.totalorder %s1506_s20, 1  ;;  %p153_p7 = scmp.eq.s32.totalorder %s150_s26, 0 }
   0xb   : > { %p1583_p8 = por %p172_p5, %p171_p3  ;;  %p232_p9 = scmp.lt.s32.totalorder %s1506_s20, 3 }
   0xc   : > { %s1589_s28 = scalar_select %p153_p7, %s1494_s17, %s155_s24  }
   0xd   : > { %p233_p10 = pnand %p1143_p6, %p232_p9 }
   0xe   : > { %v1404_v0 = vld [vmem:[%s1800_s1] sm:$0xff] (!%p233_p10)   ;;  %s1145_s5 = sshll.u32 (!%p233_p10), %s1498_s18, 5  ;;  %v1405_v1 = vld [vmem:[%s1800_s1 + $0x8] sm:$0xff] (!%p233_p10)   ;;  %v1406_v2 = vld [vmem:[%s1800_s1 + $0x10] sm:$0xff] (!%p233_p10)   ;;  %s277_s14 = sand.u32 (!%p233_p10), 1, %s1490_s16  }
   0xf   : > { %236 = sbr.rel (%p233_p10) target bundleno = 305 (0x131), region = 36  ;;  %p281_p11 = scmp.lt.s32.totalorder (!%p233_p10), %s1145_s5, 63  ;;  %1283 = vmatprep.subr.bf16.mxu0 (!%p233_p10), %v1404_v0  ;;  %1331 = vmatprep.subr.bf16.mxu1 (!%p233_p10), %v1404_v0  ;;  %v1407_v3 = vld [vmem:[%s1800_s1 + $0x18] sm:$0xff] (!%p233_p10)   ;;  %v1408_v6 = vld [vmem:[%s1800_s1 + $0x20] sm:$0xff] (!%p233_p10)   ;;  %v1409_v7 = vld [vmem:[%s1800_s1 + $0x28] sm:$0xff] (!%p233_p10)  }
  0x10   : > { %1284 = vmatpush3.bf16.msra.mxu0 (!%p233_p10), %v1404_v0  ;;  %1339 = vmatpush3.bf16.msra.mxu1 (!%p233_p10), %v1404_v0  ;;  %v1410_v8 = vld [vmem:[%s1800_s1 + $0x30] sm:$0xff] (!%p233_p10)   ;;  %v1411_v9 = vld [vmem:[%s1800_s1 + $0x38] sm:$0xff] (!%p233_p10)   ;;  %v1657_v28 = vld [vmem:[%s1801_s2] ss:$0 sm:$0xff] (!%p233_p10)  ;;  %s1753_s30 = scalar_lea.sflag (!%p233_p10), [#allocation4], %s277_s14  ;;  %s1508_s7 = smov (!%p233_p10), [#allocation3]  }
  0x11   : > { %1285 = vmatprep.subr.bf16.mxu0 (!%p233_p10), %v1405_v1  ;;  %1332 = vmatprep.subr.bf16.mxu1 (!%p233_p10), %v1405_v1  ;;  %s1432_s8 = sshll.u32 (!%p233_p10), %s1508_s7, 4  ;;  %s1433_s8 = int_to_ptr.vmem [resolvable:$false] %s1432_s8 }
  0x12   : > { %s1434_s9 = scalar_lea.vmem (!%p233_p10), %s1433_s8, 8192 }
  0x14   : > { %1286 = vmatpush3.bf16.msra.mxu0 (!%p233_p10), %v1405_v1  ;;  %1340 = vmatpush3.bf16.msra.mxu1 (!%p233_p10), %v1405_v1 }
  0x15   : > { %1287 = vmatprep.subr.bf16.mxu0 (!%p233_p10), %v1406_v2  ;;  %1333 = vmatprep.subr.bf16.mxu1 (!%p233_p10), %v1406_v2 }
  0x16   : > { %s1814_s5 = smov (!%p281_p11, %s1145_s5), 63 }
  0x17   : > { %s1146_s10 = sshll.u32 %s1814_s5, 2  ;;  %s1661_s5 = sshll.u32 %s277_s14, 8 }
  0x18   : > { %s1609_s13 = scalar_lea.vmem %s1799_s0, %s1146_s10  ;;  %1288 = vmatpush3.bf16.msra.mxu0 %v1406_v2  ;;  %1341 = vmatpush3.bf16.msra.mxu1 %v1406_v2  ;;  %s1647_s12 = scalar_lea.vmem %s1802_s3, %s1146_s10 }
  0x19   : > { %v1412_v4 = vld [vmem:[%s1609_s13] sm:$0xff]   ;;  %1289 = vmatprep.subr.bf16.mxu0 %v1407_v3  ;;  %1334 = vmatprep.subr.bf16.mxu1 %v1407_v3  ;;  %v1414_v10 = vld [vmem:[%s1609_s13 + $0x8] sm:$0xff]   ;;  %v1416_v12 = vld [vmem:[%s1609_s13 + $0x10] sm:$0xff]   ;;  %s1674_s10 = scalar_lea.vmem [#allocation3], %s1661_s5 }
  0x1a   : > { %v1413_v5 = vld [vmem:[%s1609_s13 + $0x40] sm:$0xff]   ;;  %1299 = vmatprep.mubr.bf16.mxu0 %v1412_v4  ;;  %v1415_v11 = vld [vmem:[%s1609_s13 + $0x48] sm:$0xff]   ;;  %v1417_v13 = vld [vmem:[%s1609_s13 + $0x50] sm:$0xff]   ;;  %s1014_s24 = sshll.u32 %s1674_s10, 4  ;;  %s1743_s24 = int_to_ptr.vmem [resolvable:$true] %s1014_s24 }
  0x1b   : > { %1315 = vmatprep.mubr.bf16.mxu1 %v1413_v5  ;;  %v1418_v14 = vld [vmem:[%s1609_s13 + $0x18] sm:$0xff]   ;;  %v1420_v16 = vld [vmem:[%s1609_s13 + $0x20] sm:$0xff]   ;;  %v1422_v18 = vld [vmem:[%s1609_s13 + $0x28] sm:$0xff]   ;;  %s1428_s6 = scalar_lea.vmem %s1743_s24, 4096  ;;  %p1435_p1 = scmp.lt.s32.totalorder %s1743_s24, %s1433_s8 }
  0x1c   : > { %1290 = vmatpush3.bf16.msra.mxu0 %v1407_v3  ;;  %1342 = vmatpush3.bf16.msra.mxu1 %v1407_v3  ;;  %v1419_v15 = vld [vmem:[%s1609_s13 + $0x58] sm:$0xff]   ;;  %v1421_v17 = vld [vmem:[%s1609_s13 + $0x60] sm:$0xff]   ;;  %v1423_v19 = vld [vmem:[%s1609_s13 + $0x68] sm:$0xff]   ;;  %p1429_p12 = scmp.ne.s32.totalorder %s1743_s24, %s1428_s6  ;;  %p1436_p2 = scmp.lt.s32.totalorder %s1434_s9, %s1428_s6 }
  0x1d   : > { %1291 = vmatprep.subr.bf16.mxu0 %v1408_v6  ;;  %1335 = vmatprep.subr.bf16.mxu1 %v1408_v6  ;;  %v1424_v20 = vld [vmem:[%s1609_s13 + $0x30] sm:$0xff]   ;;  %v1426_v22 = vld [vmem:[%s1609_s13 + $0x38] sm:$0xff]   ;;  %v1244_v24 = vld [vmem:[%s1647_s12 + $0x8] sm:$0xff]  }
  0x1e   : > { %v1425_v21 = vld [vmem:[%s1609_s13 + $0x70] sm:$0xff]   ;;  %v1427_v23 = vld [vmem:[%s1609_s13 + $0x78] sm:$0xff]   ;;  %v1252_v25 = vld [vmem:[%s1647_s12 + $0x48] sm:$0xff]   ;;  %v1186_v29 = vunpack.c.l.bf16 %v1244_v24  ;;  %v1187_v39 = vunpack.c.h.bf16 %v1244_v24  ;;  %s1179_s13 = sshll.u32 %s1498_s18, 12  ;;  %p1430_p13 = pnand %p1429_p12, %p1576_p4 }
  0x1f   : > { %v1181_v26 = vld [vmem:[%s1647_s12] sm:$0xff]   ;;  %v1218_v30 = vunpack.c.l.bf16 %v1252_v25  ;;  %v1219_v40 = vunpack.c.h.bf16 %v1252_v25  ;;  %v1246_v57 = vld [vmem:[%s1647_s12 + $0x18] sm:$0xff]   ;;  %v1245_v61 = vld [vmem:[%s1647_s12 + $0x10] sm:$0xff]   ;;  %s1741_s29 = scalar_lea.hbm %s1803_s4, %s1179_s13  ;;  %p1437_p3 = por %p1436_p2, %p1435_p1 }
  0x20   : > { %1292 = vmatpush3.bf16.msra.mxu0 %v1408_v6  ;;  %1343 = vmatpush3.bf16.msra.mxu1 %v1408_v6  ;;  %v1251_v27 = vld [vmem:[%s1647_s12 + $0x40] sm:$0xff]   ;;  %v1182_v33 = vunpack.c.l.bf16 %v1181_v26  ;;  %v1183_v45 = vunpack.c.h.bf16 %v1181_v26  ;;  %v1254_v58 = vld [vmem:[%s1647_s12 + $0x58] sm:$0xff]   ;;  %v1253_v62 = vld [vmem:[%s1647_s12 + $0x50] sm:$0xff]   ;;  %v1194_v1 = vunpack.c.l.bf16 %v1246_v57  ;;  %v1190_v5 = vunpack.c.l.bf16 %v1245_v61  ;;  %p1431_p0 = pneg %p1430_p13 }
  0x21   : > { %1293 = vmatprep.subr.bf16.mxu0 %v1409_v7  ;;  %1336 = vmatprep.subr.bf16.mxu1 %v1409_v7  ;;  %v1214_v34 = vunpack.c.l.bf16 %v1251_v27  ;;  %v1215_v46 = vunpack.c.h.bf16 %v1251_v27  ;;  %v1226_v2 = vunpack.c.l.bf16 %v1254_v58  ;;  %v1222_v6 = vunpack.c.l.bf16 %v1253_v62 }
  0x22   : > { %p1438_p5 = pnand %p1437_p3, %p1431_p0 }
  0x24   : > { %1294 = vmatpush3.bf16.msra.mxu0 %v1409_v7  ;;  %1344 = vmatpush3.bf16.msra.mxu1 %v1409_v7 }
  0x25   : > { %1295 = vmatprep.subr.bf16.mxu0 %v1410_v8  ;;  %1337 = vmatprep.subr.bf16.mxu1 %v1410_v8 }
  0x28   : > { %1296 = vmatpush3.bf16.msra.mxu0 %v1410_v8  ;;  %1345 = vmatpush3.bf16.msra.mxu1 %v1410_v8 }
  0x29   : > { %1297 = vmatprep.subr.bf16.mxu0 %v1411_v9  ;;  %1338 = vmatprep.subr.bf16.mxu1 %v1411_v9 }
  0x2c   : > { %1298 = vmatpush3.bf16.msra.mxu0 %v1411_v9  ;;  %1346 = vmatpush3.bf16.msra.mxu1 %v1411_v9 }
  0x2f   : > { %1300 = vmatmul.mubr.bf16.vlgmr.msra.gmra.mrb[0].mxu0 %v1414_v10  ;;  %1316 = vmatmul.mubr.bf16.vlgmr.msra.gmra.mrb[0].mxu1 %v1415_v11  ;;  %v1195_v11 = vunpack.c.h.bf16 %v1246_v57 }
  0x30   : > { %1303 = vmatprep.mubr.bf16.mxu0 %v1416_v12  ;;  %1319 = vmatprep.mubr.bf16.mxu1 %v1417_v13  ;;  %v1227_v12 = vunpack.c.h.bf16 %v1254_v58 }
  0x37   : > { %1304 = vmatmul.mubr.bf16.gmra.mrb[4].mxu0 %v1418_v14  ;;  %1320 = vmatmul.mubr.bf16.gmra.mrb[4].mxu1 %v1419_v15 }
  0x38   : > { %1307 = vmatprep.mubr.bf16.mxu0 %v1420_v16  ;;  %1323 = vmatprep.mubr.bf16.mxu1 %v1421_v17  ;;  %v1191_v17 = vunpack.c.h.bf16 %v1245_v61 }
  0x3f   : > { %1308 = vmatmul.mubr.bf16.gmra.mrb[8].mxu0 %v1422_v18  ;;  %1324 = vmatmul.mubr.bf16.gmra.mrb[8].mxu1 %v1423_v19  ;;  %v1223_v18 = vunpack.c.h.bf16 %v1253_v62 }
  0x40   : > { %1311 = vmatprep.mubr.bf16.mxu0 %v1424_v20  ;;  %1327 = vmatprep.mubr.bf16.mxu1 %v1425_v21 }
  0x47   : > { %1312 = vmatmul.mubr.bf16.gmra.mrb[12].mxu0 %v1426_v22  ;;  %1328 = vmatmul.mubr.bf16.gmra.mrb[12].mxu1 %v1427_v23 }
 0x102   : > { %v1301_v31 = vpop.f32.mrb[0].mxu0  ;;  %v1317_v32 = vpop.f32.mrb[0].mxu1 }
 0x103   : > { %v841_v35 = vadd.f32 %v1301_v31, %v1657_v28  ;;  %v857_v36 = vadd.f32 %v1317_v32, %v1657_v28  ;;  %v606_v37 = vpop.f32.mrb[1].mxu0  ;;  %v670_v38 = vpop.f32.mrb[1].mxu1  ;;  %v1256_v31 = vld [vmem:[%s1647_s12 + $0x68] sm:$0xff]  }
 0x104   : > { %v839_v41 = vadd.f32 %v1657_v28, %v606_v37  ;;  %v855_v42 = vadd.f32 %v1657_v28, %v670_v38  ;;  %v1302_v43 = vpop.f32.mrb[2].mxu0  ;;  %v1318_v44 = vpop.f32.mrb[2].mxu1 }
 0x105   : > { %v937_v47 = vadd.f32 %v1186_v29, %v841_v35  ;;  %v953_v48 = vadd.f32 %v1218_v30, %v857_v36  ;;  %v842_v49 = vadd.f32 %v1302_v43, %v1657_v28  ;;  %v858_v50 = vadd.f32 %v1318_v44, %v1657_v28  ;;  %v609_v51 = vpop.f32.mrb[3].mxu0  ;;  %v673_v52 = vpop.f32.mrb[3].mxu1  ;;  %v1248_v30 = vld [vmem:[%s1647_s12 + $0x28] sm:$0xff]   ;;  %v1255_v35 = vld [vmem:[%s1647_s12 + $0x60] sm:$0xff]  }
 0x106   : > { %v935_v53 = vadd.f32 %v1182_v33, %v839_v41  ;;  %v951_v54 = vadd.f32 %v1214_v34, %v855_v42  ;;  %v840_v55 = vadd.f32 %v1657_v28, %v609_v51  ;;  %v856_v56 = vadd.f32 %v1657_v28, %v673_v52  ;;  %v1247_v34 = vld [vmem:[%s1647_s12 + $0x20] sm:$0xff]  }
 0x107   : > { %969 = vst [vmem:[%s1674_s10 + $0x10] sm:$0xff] %v937_v47  ;;  %985 = vst [vmem:[%s1674_s10 + $0x90] sm:$0xff] %v953_v48  ;;  %v938_v59 = vadd.f32 %v1187_v39, %v842_v49  ;;  %v954_v60 = vadd.f32 %v1219_v40, %v858_v50  ;;  %v1202_v38 = vunpack.c.l.bf16 %v1248_v30  ;;  %v1234_v39 = vunpack.c.l.bf16 %v1256_v31 }
 0x108   : > { %967 = vst [vmem:[%s1674_s10] sm:$0xff] %v935_v53  ;;  %983 = vst [vmem:[%s1674_s10 + $0x80] sm:$0xff] %v951_v54  ;;  %v936_v63 = vadd.f32 %v1183_v45, %v840_v55  ;;  %v952_v0 = vadd.f32 %v1215_v46, %v856_v56  ;;  %v1198_v42 = vunpack.c.l.bf16 %v1247_v34  ;;  %v1230_v43 = vunpack.c.l.bf16 %v1255_v35 }
 0x109   : > { %970 = vst [vmem:[%s1674_s10 + $0x18] sm:$0xff] %v938_v59  ;;  %986 = vst [vmem:[%s1674_s10 + $0x98] sm:$0xff] %v954_v60  ;;  %v1203_v48 = vunpack.c.h.bf16 %v1248_v30  ;;  %v1235_v49 = vunpack.c.h.bf16 %v1256_v31  ;;  %v1199_v54 = vunpack.c.h.bf16 %v1247_v34  ;;  %v1231_v55 = vunpack.c.h.bf16 %v1255_v35 }
 0x10a   : > { %968 = vst [vmem:[%s1674_s10 + $0x8] sm:$0xff] %v936_v63  ;;  %984 = vst [vmem:[%s1674_s10 + $0x88] sm:$0xff] %v952_v0  ;;  %v1305_v3 = vpop.f32.mrb[4].mxu0  ;;  %v1321_v4 = vpop.f32.mrb[4].mxu1 }
 0x10b   : > { %v845_v7 = vadd.f32 %v1305_v3, %v1657_v28  ;;  %v861_v8 = vadd.f32 %v1321_v4, %v1657_v28  ;;  %v622_v9 = vpop.f32.mrb[5].mxu0  ;;  %v686_v10 = vpop.f32.mrb[5].mxu1  ;;  %v1258_v3 = vld [vmem:[%s1647_s12 + $0x78] sm:$0xff]  }
 0x10c   : > { %v843_v13 = vadd.f32 %v1657_v28, %v622_v9  ;;  %v859_v14 = vadd.f32 %v1657_v28, %v686_v10  ;;  %v1306_v15 = vpop.f32.mrb[6].mxu0  ;;  %v1322_v16 = vpop.f32.mrb[6].mxu1 }
 0x10d   : > { %v941_v19 = vadd.f32 %v1194_v1, %v845_v7  ;;  %v957_v20 = vadd.f32 %v1226_v2, %v861_v8  ;;  %v846_v21 = vadd.f32 %v1306_v15, %v1657_v28  ;;  %v862_v22 = vadd.f32 %v1322_v16, %v1657_v28  ;;  %v625_v23 = vpop.f32.mrb[7].mxu0  ;;  %v689_v24 = vpop.f32.mrb[7].mxu1  ;;  %v1250_v2 = vld [vmem:[%s1647_s12 + $0x38] sm:$0xff]   ;;  %v1257_v7 = vld [vmem:[%s1647_s12 + $0x70] sm:$0xff]  }
 0x10e   : > { %v939_v25 = vadd.f32 %v1190_v5, %v843_v13  ;;  %v955_v26 = vadd.f32 %v1222_v6, %v859_v14  ;;  %v844_v27 = vadd.f32 %v1657_v28, %v625_v23  ;;  %v860_v29 = vadd.f32 %v1657_v28, %v689_v24  ;;  %v1249_v6 = vld [vmem:[%s1647_s12 + $0x30] sm:$0xff]  }
 0x10f   : > { %973 = vst [vmem:[%s1674_s10 + $0x30] sm:$0xff] %v941_v19  ;;  %989 = vst [vmem:[%s1674_s10 + $0xb0] sm:$0xff] %v957_v20  ;;  %v942_v32 = vadd.f32 %v1195_v11, %v846_v21  ;;  %v958_v33 = vadd.f32 %v1227_v12, %v862_v22  ;;  %v1210_v10 = vunpack.c.l.bf16 %v1250_v2  ;;  %v1242_v11 = vunpack.c.l.bf16 %v1258_v3 }
 0x110   : > { %971 = vst [vmem:[%s1674_s10 + $0x20] sm:$0xff] %v939_v25  ;;  %987 = vst [vmem:[%s1674_s10 + $0xa0] sm:$0xff] %v955_v26  ;;  %v940_v36 = vadd.f32 %v1191_v17, %v844_v27  ;;  %v956_v37 = vadd.f32 %v1223_v18, %v860_v29  ;;  %v1206_v14 = vunpack.c.l.bf16 %v1249_v6  ;;  %v1238_v15 = vunpack.c.l.bf16 %v1257_v7 }
 0x111   : > { %974 = vst [vmem:[%s1674_s10 + $0x38] sm:$0xff] %v942_v32  ;;  %990 = vst [vmem:[%s1674_s10 + $0xb8] sm:$0xff] %v958_v33  ;;  %v1211_v20 = vunpack.c.h.bf16 %v1250_v2  ;;  %v1243_v21 = vunpack.c.h.bf16 %v1258_v3  ;;  %v1207_v26 = vunpack.c.h.bf16 %v1249_v6  ;;  %v1239_v27 = vunpack.c.h.bf16 %v1257_v7 }
 0x112   : > { %972 = vst [vmem:[%s1674_s10 + $0x28] sm:$0xff] %v940_v36  ;;  %988 = vst [vmem:[%s1674_s10 + $0xa8] sm:$0xff] %v956_v37  ;;  %v1309_v40 = vpop.f32.mrb[8].mxu0  ;;  %v1325_v41 = vpop.f32.mrb[8].mxu1 }
 0x113   : > { %v849_v44 = vadd.f32 %v1309_v40, %v1657_v28  ;;  %v865_v45 = vadd.f32 %v1325_v41, %v1657_v28  ;;  %v638_v46 = vpop.f32.mrb[9].mxu0  ;;  %v702_v47 = vpop.f32.mrb[9].mxu1 }
 0x114   : > { %v847_v50 = vadd.f32 %v1657_v28, %v638_v46  ;;  %v863_v51 = vadd.f32 %v1657_v28, %v702_v47  ;;  %v1310_v52 = vpop.f32.mrb[10].mxu0  ;;  %v1326_v53 = vpop.f32.mrb[10].mxu1 }
 0x115   : > { %v945_v56 = vadd.f32 %v1202_v38, %v849_v44  ;;  %v961_v57 = vadd.f32 %v1234_v39, %v865_v45  ;;  %v850_v58 = vadd.f32 %v1310_v52, %v1657_v28  ;;  %v866_v59 = vadd.f32 %v1326_v53, %v1657_v28  ;;  %v641_v60 = vpop.f32.mrb[11].mxu0  ;;  %v705_v61 = vpop.f32.mrb[11].mxu1 }
 0x116   : > { %v943_v62 = vadd.f32 %v1198_v42, %v847_v50  ;;  %v959_v63 = vadd.f32 %v1230_v43, %v863_v51  ;;  %v848_v0 = vadd.f32 %v1657_v28, %v641_v60  ;;  %v864_v1 = vadd.f32 %v1657_v28, %v705_v61 }
 0x117   : > { %977 = vst [vmem:[%s1674_s10 + $0x50] sm:$0xff] %v945_v56  ;;  %993 = vst [vmem:[%s1674_s10 + $0xd0] sm:$0xff] %v961_v57  ;;  %v946_v4 = vadd.f32 %v1203_v48, %v850_v58  ;;  %v962_v5 = vadd.f32 %v1235_v49, %v866_v59 }
 0x118   : > { %975 = vst [vmem:[%s1674_s10 + $0x40] sm:$0xff] %v943_v62  ;;  %991 = vst [vmem:[%s1674_s10 + $0xc0] sm:$0xff] %v959_v63  ;;  %v944_v8 = vadd.f32 %v1199_v54, %v848_v0  ;;  %v960_v9 = vadd.f32 %v1231_v55, %v864_v1 }
 0x119   : > { %978 = vst [vmem:[%s1674_s10 + $0x58] sm:$0xff] %v946_v4  ;;  %994 = vst [vmem:[%s1674_s10 + $0xd8] sm:$0xff] %v962_v5 }
 0x11a   : > { %976 = vst [vmem:[%s1674_s10 + $0x48] sm:$0xff] %v944_v8  ;;  %992 = vst [vmem:[%s1674_s10 + $0xc8] sm:$0xff] %v960_v9  ;;  %v1313_v12 = vpop.f32.mrb[12].mxu0  ;;  %v1329_v13 = vpop.f32.mrb[12].mxu1 }
 0x11b   : > { %v853_v16 = vadd.f32 %v1313_v12, %v1657_v28  ;;  %v869_v17 = vadd.f32 %v1329_v13, %v1657_v28  ;;  %v654_v18 = vpop.f32.mrb[13].mxu0  ;;  %v718_v19 = vpop.f32.mrb[13].mxu1 }
 0x11c   : > { %v851_v22 = vadd.f32 %v1657_v28, %v654_v18  ;;  %v867_v23 = vadd.f32 %v1657_v28, %v718_v19  ;;  %v1314_v24 = vpop.f32.mrb[14].mxu0  ;;  %v1330_v25 = vpop.f32.mrb[14].mxu1 }
 0x11d   : > { %v949_v29 = vadd.f32 %v1210_v10, %v853_v16  ;;  %v965_v30 = vadd.f32 %v1242_v11, %v869_v17  ;;  %v854_v31 = vadd.f32 %v1314_v24, %v1657_v28  ;;  %v870_v32 = vadd.f32 %v1330_v25, %v1657_v28  ;;  %v657_v33 = vpop.f32.mrb[15].mxu0  ;;  %v721_v34 = vpop.f32.mrb[15].mxu1 }
 0x11e   : > { %v947_v35 = vadd.f32 %v1206_v14, %v851_v22  ;;  %v963_v36 = vadd.f32 %v1238_v15, %v867_v23  ;;  %v852_v37 = vadd.f32 %v1657_v28, %v657_v33  ;;  %v868_v38 = vadd.f32 %v1657_v28, %v721_v34 }
 0x11f   : > { %981 = vst [vmem:[%s1674_s10 + $0x70] sm:$0xff] %v949_v29  ;;  %997 = vst [vmem:[%s1674_s10 + $0xf0] sm:$0xff] %v965_v30  ;;  %v950_v39 = vadd.f32 %v1211_v20, %v854_v31  ;;  %v966_v40 = vadd.f32 %v1243_v21, %v870_v32 }
 0x120   : > { %979 = vst [vmem:[%s1674_s10 + $0x60] sm:$0xff] %v947_v35  ;;  %995 = vst [vmem:[%s1674_s10 + $0xe0] sm:$0xff] %v963_v36  ;;  %v948_v41 = vadd.f32 %v1207_v26, %v852_v37  ;;  %v964_v42 = vadd.f32 %v1239_v27, %v868_v38 }
 0x121   : > { %982 = vst [vmem:[%s1674_s10 + $0x78] sm:$0xff] %v950_v39  ;;  %998 = vst [vmem:[%s1674_s10 + $0xf8] sm:$0xff] %v966_v40 }
 0x122   : > { %980 = vst [vmem:[%s1674_s10 + $0x68] sm:$0xff] %v948_v41  ;;  %996 = vst [vmem:[%s1674_s10 + $0xe8] sm:$0xff] %v964_v42 }
 0x123   : > { %1441 = shalt.err (!%p1438_p5)
}
 0x124   : > { %s1442_s11 = scalar_lea.hbm %s1741_s29, 4096  ;;  %s1446_s21 = scalar_lea.hbm %s1803_s4, 8192 }
 0x125   : > { %p1443_p6 = scmp.ne.s32.totalorder %s1741_s29, %s1442_s11  ;;  %p1447_p10 = scmp.lt.u32.totalorder %s1741_s29, %s1803_s4 }
 0x126   : > { %p1448_p11 = scmp.lt.u32.totalorder %s1446_s21, %s1442_s11  ;;  %p1450_p13 = scmp.lt.u32.totalorder %s1442_s11, %s1741_s29 }
 0x127   : > { %p1444_p7 = pnand %p1443_p6, %p1576_p4 }
 0x128   : > { %p1449_p12 = por %p1448_p11, %p1447_p10 }
 0x129   : > { %p1445_p9 = pneg %p1444_p7 }
 0x12a   : > { %p1451_p0 = por %p1450_p13, %p1449_p12 }
 0x12c   : > { %p1452_p1 = pnand %p1451_p0, %p1445_p9 }
 0x12e   : > { %1455 = shalt.err (!%p1452_p1)
}
 0x12f   : > { %s1509_s10 = smov 128   ;;  %s1510_s13 = smov 8  }
 0x130   : > { %1347 = dma.vmem_to_hbm [thread:$0]  (%p1576_p4), %s1743_s24, 4096, %s1741_s29, %s1753_s30, %s1509_s10, %s1509_s10, %s1510_s13  }
 0x131 PF: > { %p1353_p2 = scmp.ge.s32.totalorder %s1506_s20, 2  ;;  %s1029_s18 = sand.u32 1, %s1486_s15  }
 0x132   : > { %s1030_s26 = scalar_lea.sflag [#allocation4], %s1029_s18 }
 0x133   : > { %p1350_p3 = pnand %p1353_p2, %p1583_p8 }
 0x135   : > { %1481 = dma.done.wait (!%p1350_p3), %s1030_s26, 4096  }
 0x136   : > { %1483 = vsyncadd (!%p1350_p3), %s1030_s26, 4294963200  ;;  %s17_s20 = sadd.s32 1, %s1506_s20   ;;  %s1806_s15 = smov %s1490_s16 }
 0x137   : > { %p14_p5 = scmp.ge.s32.totalorder %s17_s20, 4   ;;  %s1807_s16 = smov %s1494_s17 }
 0x138   : > { %s1808_s17 = smov %s1589_s28  ;;  %s1809_s18 = smov %s1502_s19 }
 0x139   : > { %s1810_s19 = smov %s1812_s23  ;;  %16 = sbr.rel (!%p14_p5) target bundleno = 4 (0x4), region = 88 }
 0x140   :  { %1035 = vsyncpa [#allocation4], 1 }
 0x141   :  { %1037 = vsyncpa [#allocation4 + $0x1], 1 }

</bundles_post_ra>
